<compile_context>
chip_gen: v5e
topology: v5e:2x2
jax: 0.10.0
libtpu: 0.0.40
codegen_flags: <defaults>
</compile_context>

<pallas_src>
import functools

import jax
import jax.numpy as jnp
from jax import lax
from jax.experimental import pallas as pl
from jax.experimental.pallas import tpu as pltpu


def _pick_tb(batch):
    """Batch rows per grid step (batch-aware, per review).

    128 keeps outputs lane-dense and lets v7x's second TensorCore pick up
    tiles for small batches; 256 only when the padded batch has >= 512 rows,
    which fills v6e's 2x256 MXU M dimension without starving a v7x core.
    """
    b_pad128 = ((batch + 127) // 128) * 128
    return 256 if b_pad128 >= 512 else 128


# ----------------------------- kernel bodies ------------------------------

def _log1p01(z):
    """log1p(z) for z in [0, 1], accurate for tiny z without a log1p lowering."""
    return jnp.where(z < 1e-4, z * (1.0 - 0.5 * z), jnp.log(1.0 + z))


def _tile_logits(ids_ref, mask_ref, table_ref, w1_ref, b1_ref, w2t_ref,
                 b2_ref):
    """Fused one-hot gather + masked mean pool + MLP for one batch tile.

    Returns logits laid out lane-dense as [1, TB] (batch on the lane axis).
    """
    ids = ids_ref[...]                                        # (TB, S) int32
    mask = mask_ref[...]                                      # (TB, S) f32
    tb, seq = ids.shape
    vocab = table_ref.shape[0]

    # Mask-weighted one-hot counts (weighted by mask, NOT pure counts, so
    # non-binary masks keep working):
    #   counts[b, v] = sum_s mask[b, s] * (ids[b, s] == v)
    # Built with a short static loop of VPU compares/selects; replaces the old
    # serial per-row gather into a scratch buffer entirely.
    iota_v = lax.broadcasted_iota(jnp.int32, (tb, vocab), 1)  # (TB, V)
    counts = jnp.zeros((tb, vocab), jnp.float32)
    for s in range(seq):                                      # seq is small & static
        counts = counts + jnp.where(ids[:, s:s + 1] == iota_v,
                                    mask[:, s:s + 1], 0.0)

    # Gather + masked-sum pool as ONE [TB, V] @ [V, H] MXU matmul (bf16 in,
    # f32 accumulate).  Counts are small integers for 0/1 masks -> bf16 exact.
    summed = jnp.dot(counts.astype(table_ref.dtype), table_ref[...],
                     preferred_element_type=jnp.float32)      # (TB, H) f32

    # Vectorized masked-mean denominator: one reduce + one broadcast multiply.
    denom = jnp.maximum(jnp.sum(mask, axis=-1, keepdims=True), 1.0)  # (TB, 1)
    pooled = summed * (1.0 / denom)                           # exact f32 recip

    # dense(H, H) + tanh over the whole batch tile (bf16 MXU, f32 accumulate).
    hid = jnp.tanh(jnp.dot(pooled.astype(w1_ref.dtype), w1_ref[...],
                           preferred_element_type=jnp.float32) + b1_ref[...])

    # classifier head dense(H, 1), contracted against hid's H axis so the
    # result lands lane-dense as [1, TB] (no N=1 matmul, no masked stores).
    logits = lax.dot_general(w2t_ref[...], hid, (((1,), (1,)), ((), ())),
                             preferred_element_type=jnp.float32) + b2_ref[...]
    return logits                                             # (1, TB)


def _probs_kernel(ids_ref, mask_ref, table_ref, w1_ref, b1_ref, w2t_ref,
                  b2_ref, probs_ref):
    logits = _tile_logits(ids_ref, mask_ref, table_ref, w1_ref, b1_ref,
                          w2t_ref, b2_ref)
    probs_ref[...] = 1.0 / (1.0 + jnp.exp(-logits))


def _loss_kernel(ids_ref, mask_ref, table_ref, w1_ref, b1_ref, w2t_ref,
                 b2_ref, labels_ref, probs_ref, bce_ref):
    logits = _tile_logits(ids_ref, mask_ref, table_ref, w1_ref, b1_ref,
                          w2t_ref, b2_ref)
    probs_ref[...] = 1.0 / (1.0 + jnp.exp(-logits))
    y = labels_ref[...]                                   # [1, TB] lane-dense
    # numerically-stable BCEWithLogits elements: max(x,0) - x*y + log1p(e^-|x|)
    bce_ref[...] = (jnp.maximum(logits, 0.0) - logits * y
                    + _log1p01(jnp.exp(-jnp.abs(logits))))


# ------------------------------ specs / wrapper ----------------------------

def _const_spec(shape):
    nd = len(shape)
    return pl.BlockSpec(shape, lambda i: (0,) * nd)     # resident across grid


def _grid_spec(b_pad, tb, seq, vocab, hidden, with_labels):
    in_specs = [
        pl.BlockSpec((tb, seq), lambda i: (i, 0)),      # token ids (VMEM)
        pl.BlockSpec((tb, seq), lambda i: (i, 0)),      # attention mask
        _const_spec((vocab, hidden)),                   # embedding table (bf16)
        _const_spec((hidden, hidden)),                  # w1 (bf16)
        _const_spec((1, hidden)),                       # b1
        _const_spec((1, hidden)),                       # w2^T
        _const_spec((1, 1)),                            # b2
    ]
    lane_spec = pl.BlockSpec((1, tb), lambda i: (0, i))
    if with_labels:
        in_specs.append(lane_spec)                      # labels, lane-dense
        out_specs = (lane_spec, lane_spec)              # probs, bce elems
    else:
        out_specs = lane_spec
    return pltpu.PrefetchScalarGridSpec(
        num_scalar_prefetch=0,
        grid=(b_pad // tb,),
        in_specs=in_specs,
        out_specs=out_specs,
    )


def init_params(key, vocab_size=128, hidden=128):
    k0, k1, k2 = jax.random.split(key, 3)
    scale = 0.02
    return {
        # MXU-facing weights stored in bf16 (f32 accumulation in-kernel).
        "embedding": (scale * jax.random.normal(k0, (vocab_size, hidden),
                                                jnp.float32)
                      ).astype(jnp.bfloat16),
        "w1": (scale * jax.random.normal(k1, (hidden, hidden), jnp.float32)
               ).astype(jnp.bfloat16),
        "b1": jnp.zeros((1, hidden), jnp.float32),
        # head weight stored pre-transposed as [1, H]; tiny, kept f32
        "w2t": scale * jax.random.normal(k2, (1, hidden), jnp.float32),
        "b2": jnp.zeros((1, 1), jnp.float32),
    }


@functools.partial(jax.jit, static_argnames=("with_labels",))
def _critic_forward_impl(params, input_ids, attention_mask, labels,
                         with_labels):
    B, S = input_ids.shape
    V, H = params["embedding"].shape
    tb = _pick_tb(B)
    b_pad = ((B + tb - 1) // tb) * tb

    # Glue: pad the batch to a tile multiple (padded rows get an all-zero mask,
    # so they pool to zero and are sliced away below).
    ids_pad = jnp.zeros((b_pad, S), jnp.int32).at[:B].set(
        input_ids.astype(jnp.int32))
    mask_pad = jnp.zeros((b_pad, S), jnp.float32).at[:B].set(
        attention_mask.astype(jnp.float32))

    # TODO(synk): for real HF-sized vocab (e.g. 32K x 768), the [V, H] table
    # cannot stay VMEM-resident on v7x (64 MiB): tile the vocab axis and
    # accumulate one-hot-tile matmuls, or stream the table from HBM with a
    # manual double-buffered DMA (memory_space=pl.ANY).

    common = (ids_pad, mask_pad, params["embedding"], params["w1"],
              params["b1"], params["w2t"], params["b2"])
    cparams = pltpu.CompilerParams(dimension_semantics=("parallel",))

    if not with_labels:
        probs_row = pl.pallas_call(
            _probs_kernel,
            out_shape=jax.ShapeDtypeStruct((1, b_pad), jnp.float32),
            grid_spec=_grid_spec(b_pad, tb, S, V, H, with_labels=False),
            compiler_params=cparams,
        )(*common)
        return probs_row[0, :B].reshape(B, 1)

    labels_row = jnp.zeros((1, b_pad), jnp.float32).at[0, :B].set(
        labels.astype(jnp.float32))
    probs_row, bce_row = pl.pallas_call(
        _loss_kernel,
        out_shape=(jax.ShapeDtypeStruct((1, b_pad), jnp.float32),
                   jax.ShapeDtypeStruct((1, b_pad), jnp.float32)),
        grid_spec=_grid_spec(b_pad, tb, S, V, H, with_labels=True),
        compiler_params=cparams,
    )(*common, labels_row)
    loss = jnp.sum(bce_row[0, :B]) / B        # mean over the TRUE batch size
    return loss, probs_row[0, :B].reshape(B, 1)


def critic_forward(params, input_ids, attention_mask, labels=None):
    """Mirrors Model.forward: probs, or (loss, probs) when labels are given."""
    if labels is None:
        dummy = jnp.zeros((input_ids.shape[0],), jnp.float32)
        return _critic_forward_impl(params, input_ids, attention_mask, dummy,
                                    with_labels=False)
    return _critic_forward_impl(params, input_ids, attention_mask, labels,
                                with_labels=True)


# --------------------------- pure-JAX reference ----------------------------

def _reference(params, input_ids, attention_mask, labels):
    emb = params["embedding"].astype(jnp.float32)[input_ids]   # [B, S, H]
    m = attention_mask.astype(jnp.float32)                     # [B, S]
    denom = jnp.maximum(m.sum(-1, keepdims=True), 1.0)
    pooled = jnp.einsum("bs,bsh->bh", m, emb) * (1.0 / denom)
    # mirror the kernel's mixed precision: bf16 MXU operands, f32 accumulate
    h = jnp.tanh(jnp.dot(pooled.astype(jnp.bfloat16), params["w1"],
                         preferred_element_type=jnp.float32) + params["b1"])
    logits = h @ params["w2t"].T + params["b2"]                 # [B, 1]
    probs = jax.nn.sigmoid(logits)
    y = labels.astype(jnp.float32)[:, None]
    elem = (jnp.maximum(logits, 0.0) - logits * y
            + jnp.log1p(jnp.exp(-jnp.abs(logits))))
    return jnp.mean(elem), probs


# --------------------------------- main ------------------------------------

if __name__ == "__main__":
    key = jax.random.PRNGKey(0)
    k_par, k_ids, k_lab = jax.random.split(key, 3)

    B, S, H, V = 2, 8, 128, 128
    params = init_params(k_par, vocab_size=V, hidden=H)

    input_ids = jax.random.randint(k_ids, (B, S), 0, V, dtype=jnp.int32)
    attention_mask = jnp.array([[1.0] * S,
                                [1.0] * (S - 2) + [0.0, 0.0]], jnp.float32)
    labels = jax.random.bernoulli(k_lab, 0.5, (B,)).astype(jnp.float32)

    # inference path (labels=None) -> probs only
    probs_only = critic_forward(params, input_ids, attention_mask)
    probs_only = jax.block_until_ready(probs_only)

    # training path (with labels) -> (loss, probs)
    loss, probs = critic_forward(params, input_ids, attention_mask, labels)
    loss, probs = jax.block_until_ready((loss, probs))

    ref_loss, ref_probs = _reference(params, input_ids, attention_mask, labels)
    assert probs.shape == (B, 1)
    assert jnp.allclose(probs, ref_probs, atol=1e-5, rtol=1e-5)
    assert jnp.allclose(probs_only, ref_probs, atol=1e-5, rtol=1e-5)
    assert jnp.allclose(loss, ref_loss, atol=1e-5, rtol=1e-5)

    print("KERNEL_OK")
</pallas_src>

<mosaic_0001>
module attributes {stable_mosaic.version = 11 : i64} {
  func.func @_probs_kernel(%arg0: i32, %arg1: memref<128x8xi32, #tpu.memory_space<vmem>>, %arg2: memref<128x8xf32, #tpu.memory_space<vmem>>, %arg3: memref<128x128xbf16, #tpu.memory_space<vmem>>, %arg4: memref<128x128xbf16, #tpu.memory_space<vmem>>, %arg5: memref<1x128xf32, #tpu.memory_space<vmem>>, %arg6: memref<1x128xf32, #tpu.memory_space<vmem>>, %arg7: memref<1x1xf32, #tpu.memory_space<vmem>>, %arg8: memref<1x128xf32, #tpu.memory_space<vmem>>) attributes {dimension_semantics = [#tpu.dimension_semantics<parallel>], iteration_bounds = array<i64: 1>, scalar_prefetch = 0 : i64, scratch_operands = 0 : i64, tpu.core_type = #tpu.core_type<tc>, window_params = [{transform_indices = @transform_0, window_bounds = array<i64: 128, 8>}, {transform_indices = @transform_1, window_bounds = array<i64: 128, 8>}, {pipeline_mode = #tpu.pipeline_mode<synchronous>, transform_indices = @transform_2, window_bounds = array<i64: 128, 128>}, {pipeline_mode = #tpu.pipeline_mode<synchronous>, transform_indices = @transform_3, window_bounds = array<i64: 128, 128>}, {pipeline_mode = #tpu.pipeline_mode<synchronous>, transform_indices = @transform_4, window_bounds = array<i64: 1, 128>}, {pipeline_mode = #tpu.pipeline_mode<synchronous>, transform_indices = @transform_5, window_bounds = array<i64: 1, 128>}, {pipeline_mode = #tpu.pipeline_mode<synchronous>, transform_indices = @transform_6, window_bounds = array<i64: 1, 1>}, {transform_indices = @transform_7, window_bounds = array<i64: 1, 128>}]} {
    %c0 = arith.constant 0 : index
    %c0_0 = arith.constant 0 : index
    %0 = vector.load %arg1[%c0, %c0_0] : memref<128x8xi32, #tpu.memory_space<vmem>>, vector<128x8xi32>
    %c0_1 = arith.constant 0 : index
    %c0_2 = arith.constant 0 : index
    %1 = vector.load %arg2[%c0_1, %c0_2] : memref<128x8xf32, #tpu.memory_space<vmem>>, vector<128x8xf32>
    %2 = tpu.iota {dimensions = array<i32: 1>} : vector<128x128xi32>
    %cst = arith.constant 0.000000e+00 : f32
    %3 = vector.broadcast %cst : f32 to vector<128x128xf32>
    %4 = vector.extract_strided_slice %0 {offsets = [0, 0], sizes = [128, 1], strides = [1, 1]} : vector<128x8xi32> to vector<128x1xi32>
    %5 = vector.broadcast %4 : vector<128x1xi32> to vector<128x128xi32>
    %6 = arith.cmpi eq, %5, %2 : vector<128x128xi32>
    %7 = vector.extract_strided_slice %1 {offsets = [0, 0], sizes = [128, 1], strides = [1, 1]} : vector<128x8xf32> to vector<128x1xf32>
    %cst_3 = arith.constant 0.000000e+00 : f32
    %8 = vector.shape_cast %7 : vector<128x1xf32> to vector<128x1xf32>
    %9 = vector.broadcast %8 : vector<128x1xf32> to vector<128x128xf32>
    %10 = vector.broadcast %cst_3 : f32 to vector<128x128xf32>
    %11 = arith.select %6, %9, %10 : vector<128x128xi1>, vector<128x128xf32>
    %12 = arith.addf %3, %11 : vector<128x128xf32>
    %13 = vector.extract_strided_slice %0 {offsets = [0, 1], sizes = [128, 1], strides = [1, 1]} : vector<128x8xi32> to vector<128x1xi32>
    %14 = vector.broadcast %13 : vector<128x1xi32> to vector<128x128xi32>
    %15 = arith.cmpi eq, %14, %2 : vector<128x128xi32>
    %16 = vector.extract_strided_slice %1 {offsets = [0, 1], sizes = [128, 1], strides = [1, 1]} : vector<128x8xf32> to vector<128x1xf32>
    %cst_4 = arith.constant 0.000000e+00 : f32
    %17 = vector.shape_cast %16 : vector<128x1xf32> to vector<128x1xf32>
    %18 = vector.broadcast %17 : vector<128x1xf32> to vector<128x128xf32>
    %19 = vector.broadcast %cst_4 : f32 to vector<128x128xf32>
    %20 = arith.select %15, %18, %19 : vector<128x128xi1>, vector<128x128xf32>
    %21 = arith.addf %12, %20 : vector<128x128xf32>
    %22 = vector.extract_strided_slice %0 {offsets = [0, 2], sizes = [128, 1], strides = [1, 1]} : vector<128x8xi32> to vector<128x1xi32>
    %23 = vector.broadcast %22 : vector<128x1xi32> to vector<128x128xi32>
    %24 = arith.cmpi eq, %23, %2 : vector<128x128xi32>
    %25 = vector.extract_strided_slice %1 {offsets = [0, 2], sizes = [128, 1], strides = [1, 1]} : vector<128x8xf32> to vector<128x1xf32>
    %cst_5 = arith.constant 0.000000e+00 : f32
    %26 = vector.shape_cast %25 : vector<128x1xf32> to vector<128x1xf32>
    %27 = vector.broadcast %26 : vector<128x1xf32> to vector<128x128xf32>
    %28 = vector.broadcast %cst_5 : f32 to vector<128x128xf32>
    %29 = arith.select %24, %27, %28 : vector<128x128xi1>, vector<128x128xf32>
    %30 = arith.addf %21, %29 : vector<128x128xf32>
    %31 = vector.extract_strided_slice %0 {offsets = [0, 3], sizes = [128, 1], strides = [1, 1]} : vector<128x8xi32> to vector<128x1xi32>
    %32 = vector.broadcast %31 : vector<128x1xi32> to vector<128x128xi32>
    %33 = arith.cmpi eq, %32, %2 : vector<128x128xi32>
    %34 = vector.extract_strided_slice %1 {offsets = [0, 3], sizes = [128, 1], strides = [1, 1]} : vector<128x8xf32> to vector<128x1xf32>
    %cst_6 = arith.constant 0.000000e+00 : f32
    %35 = vector.shape_cast %34 : vector<128x1xf32> to vector<128x1xf32>
    %36 = vector.broadcast %35 : vector<128x1xf32> to vector<128x128xf32>
    %37 = vector.broadcast %cst_6 : f32 to vector<128x128xf32>
    %38 = arith.select %33, %36, %37 : vector<128x128xi1>, vector<128x128xf32>
    %39 = arith.addf %30, %38 : vector<128x128xf32>
    %40 = vector.extract_strided_slice %0 {offsets = [0, 4], sizes = [128, 1], strides = [1, 1]} : vector<128x8xi32> to vector<128x1xi32>
    %41 = vector.broadcast %40 : vector<128x1xi32> to vector<128x128xi32>
    %42 = arith.cmpi eq, %41, %2 : vector<128x128xi32>
    %43 = vector.extract_strided_slice %1 {offsets = [0, 4], sizes = [128, 1], strides = [1, 1]} : vector<128x8xf32> to vector<128x1xf32>
    %cst_7 = arith.constant 0.000000e+00 : f32
    %44 = vector.shape_cast %43 : vector<128x1xf32> to vector<128x1xf32>
    %45 = vector.broadcast %44 : vector<128x1xf32> to vector<128x128xf32>
    %46 = vector.broadcast %cst_7 : f32 to vector<128x128xf32>
    %47 = arith.select %42, %45, %46 : vector<128x128xi1>, vector<128x128xf32>
    %48 = arith.addf %39, %47 : vector<128x128xf32>
    %49 = vector.extract_strided_slice %0 {offsets = [0, 5], sizes = [128, 1], strides = [1, 1]} : vector<128x8xi32> to vector<128x1xi32>
    %50 = vector.broadcast %49 : vector<128x1xi32> to vector<128x128xi32>
    %51 = arith.cmpi eq, %50, %2 : vector<128x128xi32>
    %52 = vector.extract_strided_slice %1 {offsets = [0, 5], sizes = [128, 1], strides = [1, 1]} : vector<128x8xf32> to vector<128x1xf32>
    %cst_8 = arith.constant 0.000000e+00 : f32
    %53 = vector.shape_cast %52 : vector<128x1xf32> to vector<128x1xf32>
    %54 = vector.broadcast %53 : vector<128x1xf32> to vector<128x128xf32>
    %55 = vector.broadcast %cst_8 : f32 to vector<128x128xf32>
    %56 = arith.select %51, %54, %55 : vector<128x128xi1>, vector<128x128xf32>
    %57 = arith.addf %48, %56 : vector<128x128xf32>
    %58 = vector.extract_strided_slice %0 {offsets = [0, 6], sizes = [128, 1], strides = [1, 1]} : vector<128x8xi32> to vector<128x1xi32>
    %59 = vector.broadcast %58 : vector<128x1xi32> to vector<128x128xi32>
    %60 = arith.cmpi eq, %59, %2 : vector<128x128xi32>
    %61 = vector.extract_strided_slice %1 {offsets = [0, 6], sizes = [128, 1], strides = [1, 1]} : vector<128x8xf32> to vector<128x1xf32>
    %cst_9 = arith.constant 0.000000e+00 : f32
    %62 = vector.shape_cast %61 : vector<128x1xf32> to vector<128x1xf32>
    %63 = vector.broadcast %62 : vector<128x1xf32> to vector<128x128xf32>
    %64 = vector.broadcast %cst_9 : f32 to vector<128x128xf32>
    %65 = arith.select %60, %63, %64 : vector<128x128xi1>, vector<128x128xf32>
    %66 = arith.addf %57, %65 : vector<128x128xf32>
    %67 = vector.extract_strided_slice %0 {offsets = [0, 7], sizes = [128, 1], strides = [1, 1]} : vector<128x8xi32> to vector<128x1xi32>
    %68 = vector.broadcast %67 : vector<128x1xi32> to vector<128x128xi32>
    %69 = arith.cmpi eq, %68, %2 : vector<128x128xi32>
    %70 = vector.extract_strided_slice %1 {offsets = [0, 7], sizes = [128, 1], strides = [1, 1]} : vector<128x8xf32> to vector<128x1xf32>
    %cst_10 = arith.constant 0.000000e+00 : f32
    %71 = vector.shape_cast %70 : vector<128x1xf32> to vector<128x1xf32>
    %72 = vector.broadcast %71 : vector<128x1xf32> to vector<128x128xf32>
    %73 = vector.broadcast %cst_10 : f32 to vector<128x128xf32>
    %74 = arith.select %69, %72, %73 : vector<128x128xi1>, vector<128x128xf32>
    %75 = arith.addf %66, %74 : vector<128x128xf32>
    %76 = arith.truncf %75 : vector<128x128xf32> to vector<128x128xbf16>
    %c0_11 = arith.constant 0 : index
    %c0_12 = arith.constant 0 : index
    %77 = vector.load %arg3[%c0_11, %c0_12] : memref<128x128xbf16, #tpu.memory_space<vmem>>, vector<128x128xbf16>
    %cst_13 = arith.constant dense<0.000000e+00> : vector<128x128xf32>
    %78 = tpu.matmul %76, %77, %cst_13 {dimension_numbers = #tpu.dot_dimension_numbers<[1], [0], [0], [1], [0, 0, 1, 1], [], []>} : vector<128x128xbf16>, vector<128x128xbf16>, vector<128x128xf32> -> vector<128x128xf32>
    %cst_14 = arith.constant dense<0.000000e+00> : vector<128xf32>
    %79 = vector.multi_reduction <add>, %1, %cst_14 [1] : vector<128x8xf32> to vector<128xf32>
    %80 = vector.shape_cast %79 : vector<128xf32> to vector<128x1xf32>
    %cst_15 = arith.constant 1.000000e+00 : f32
    %81 = vector.broadcast %cst_15 : f32 to vector<128x1xf32>
    %82 = arith.maximumf %80, %81 : vector<128x1xf32>
    %cst_16 = arith.constant 1.000000e+00 : f32
    %83 = vector.broadcast %cst_16 : f32 to vector<128x1xf32>
    %84 = arith.divf %83, %82 : vector<128x1xf32>
    %85 = vector.broadcast %84 : vector<128x1xf32> to vector<128x128xf32>
    %86 = arith.mulf %78, %85 : vector<128x128xf32>
    %87 = arith.truncf %86 : vector<128x128xf32> to vector<128x128xbf16>
    %c0_17 = arith.constant 0 : index
    %c0_18 = arith.constant 0 : index
    %88 = vector.load %arg4[%c0_17, %c0_18] : memref<128x128xbf16, #tpu.memory_space<vmem>>, vector<128x128xbf16>
    %cst_19 = arith.constant dense<0.000000e+00> : vector<128x128xf32>
    %89 = tpu.matmul %87, %88, %cst_19 {dimension_numbers = #tpu.dot_dimension_numbers<[1], [0], [0], [1], [0, 0, 1, 1], [], []>} : vector<128x128xbf16>, vector<128x128xbf16>, vector<128x128xf32> -> vector<128x128xf32>
    %c0_20 = arith.constant 0 : index
    %c0_21 = arith.constant 0 : index
    %90 = vector.load %arg5[%c0_20, %c0_21] : memref<1x128xf32, #tpu.memory_space<vmem>>, vector<1x128xf32>
    %91 = vector.broadcast %90 : vector<1x128xf32> to vector<128x128xf32>
    %92 = arith.addf %89, %91 : vector<128x128xf32>
    %93 = math.tanh %92 : vector<128x128xf32>
    %c0_22 = arith.constant 0 : index
    %c0_23 = arith.constant 0 : index
    %94 = vector.load %arg6[%c0_22, %c0_23] : memref<1x128xf32, #tpu.memory_space<vmem>>, vector<1x128xf32>
    %cst_24 = arith.constant dense<0.000000e+00> : vector<1x128xf32>
    %95 = tpu.matmul %94, %93, %cst_24 {dimension_numbers = #tpu.dot_dimension_numbers<[1], [1], [0], [0], [0, 0, 1, 0], [], []>} : vector<1x128xf32>, vector<128x128xf32>, vector<1x128xf32> -> vector<1x128xf32>
    %c0_25 = arith.constant 0 : index
    %c0_26 = arith.constant 0 : index
    %96 = vector.load %arg7[%c0_25, %c0_26] : memref<1x1xf32, #tpu.memory_space<vmem>>, vector<1x1xf32>
    %97 = vector.broadcast %96 : vector<1x1xf32> to vector<1x128xf32>
    %98 = arith.addf %95, %97 : vector<1x128xf32>
    %cst_27 = arith.constant 0.000000e+00 : f32
    %99 = vector.broadcast %cst_27 : f32 to vector<1x128xf32>
    %100 = arith.subf %99, %98 : vector<1x128xf32>
    %101 = math.exp %100 : vector<1x128xf32>
    %cst_28 = arith.constant 1.000000e+00 : f32
    %102 = vector.broadcast %cst_28 : f32 to vector<1x128xf32>
    %103 = arith.addf %102, %101 : vector<1x128xf32>
    %cst_29 = arith.constant 1.000000e+00 : f32
    %104 = vector.broadcast %cst_29 : f32 to vector<1x128xf32>
    %105 = arith.divf %104, %103 : vector<1x128xf32>
    %c0_30 = arith.constant 0 : index
    %c0_31 = arith.constant 0 : index
    %106 = vector.load %arg8[%c0_30, %c0_31] : memref<1x128xf32, #tpu.memory_space<vmem>>, vector<1x128xf32>
    tpu.vector_store %arg8[%c0_30, %c0_31], %105 {strides = array<i32>} : memref<1x128xf32, #tpu.memory_space<vmem>>, vector<1x128xf32>,
    return
  }
  func.func @transform_0(%arg0: i32) -> (i32, i32) {
    %c0_i32 = arith.constant 0 : i32
    %c0_i32_0 = arith.constant 0 : i32
    return %arg0, %c0_i32 : i32, i32
  }
  func.func @transform_1(%arg0: i32) -> (i32, i32) {
    %c0_i32 = arith.constant 0 : i32
    %c0_i32_0 = arith.constant 0 : i32
    return %arg0, %c0_i32 : i32, i32
  }
  func.func @transform_2(%arg0: i32) -> (i32, i32) {
    %c0_i32 = arith.constant 0 : i32
    %c0_i32_0 = arith.constant 0 : i32
    %c0_i32_1 = arith.constant 0 : i32
    return %c0_i32, %c0_i32_0 : i32, i32
  }
  func.func @transform_3(%arg0: i32) -> (i32, i32) {
    %c0_i32 = arith.constant 0 : i32
    %c0_i32_0 = arith.constant 0 : i32
    %c0_i32_1 = arith.constant 0 : i32
    return %c0_i32, %c0_i32_0 : i32, i32
  }
  func.func @transform_4(%arg0: i32) -> (i32, i32) {
    %c0_i32 = arith.constant 0 : i32
    %c0_i32_0 = arith.constant 0 : i32
    %c0_i32_1 = arith.constant 0 : i32
    return %c0_i32, %c0_i32_0 : i32, i32
  }
  func.func @transform_5(%arg0: i32) -> (i32, i32) {
    %c0_i32 = arith.constant 0 : i32
    %c0_i32_0 = arith.constant 0 : i32
    %c0_i32_1 = arith.constant 0 : i32
    return %c0_i32, %c0_i32_0 : i32, i32
  }
  func.func @transform_6(%arg0: i32) -> (i32, i32) {
    %c0_i32 = arith.constant 0 : i32
    %c0_i32_0 = arith.constant 0 : i32
    %c0_i32_1 = arith.constant 0 : i32
    return %c0_i32, %c0_i32_0 : i32, i32
  }
  func.func @transform_7(%arg0: i32) -> (i32, i32) {
    %c0_i32 = arith.constant 0 : i32
    %c0_i32_0 = arith.constant 0 : i32
    return %c0_i32, %arg0 : i32, i32
  }
}

</mosaic_0001>

<bundles_post_ra>
// kernel: _critic_forward_impl.1
= control target key start
LH: loop header
LB: loop body
LE: loop exit
PB: predicated region body
PF: predicated region fallthrough
CT: control target
= control target key end

     0   :  { %v3977_v0 = vmov 0   ;;  %v2268_v33 = vmov 1   ;;  %v2269_v58 = vmov 2   ;;  %s3969_s0 = inlined_call_operand.vmem [shape: s32[128,8], index: 0, kind: input, shape index: {}]   ;;  %s3970_s1 = inlined_call_operand.vmem [shape: f32[128,8], index: 1, kind: input, shape index: {}]   ;;  %s3971_s2 = inlined_call_operand.vmem [shape: bf16[128,128], index: 2, kind: input, shape index: {}]   ;;  %s3972_s3 = inlined_call_operand.vmem [shape: bf16[128,128], index: 3, kind: input, shape index: {}]   ;;  %s3973_s4 = inlined_call_operand.vmem [shape: f32[1,128], index: 4, kind: input, shape index: {}]   ;;  %s3974_s6 = inlined_call_operand.<no memory space> [shape: f32[1,1], index: 6, kind: input, shape index: {}]   ;;  %s3975_s5 = inlined_call_operand.vmem [shape: f32[1,128], index: 5, kind: input, shape index: {}]   ;;  %s3976_s7 = inlined_call_operand.vmem [shape: f32[1,128], index: 7, kind: output, shape index: {}]  }
   0x1   :  { %2099 = vset.pattern.permute.xlu2 %v3977_v0  ;;  %2098 = vset.pattern.permute.xlu1 %v3977_v0  ;;  %v2320_v1 = vld [vmem:[%s3969_s0 + $0x20] sm:$0xff]  ;;  %v2325_v2 = vld [vmem:[%s3969_s0 + $0x10] sm:$0xff]  ;;  %v2339_v4 = vld [vmem:[%s3969_s0 + $0x28] sm:$0xff] }
   0x2   :  { %v2330_v3 = vld [vmem:[%s3969_s0] sm:$0xff]  ;;  %2097 = vset.pattern.permute.xlu0 %v3977_v0  ;;  %75 = vperm.xlu2 %2099, %v2320_v1   ;;  %3999 = vst [vmem:[#allocation3_spill] sm:$0xff] %v2339_v4  ;;  %v2344_v5 = vld [vmem:[%s3969_s0 + $0x18] sm:$0xff]  ;;  %v2349_v6 = vld [vmem:[%s3969_s0 + $0x8] sm:$0xff] }
   0x3   :  { %69 = vperm.xlu1 %2098, %v2325_v2   ;;  %63 = vperm.xlu0 %2097, %v2330_v3   ;;  %v2357_v7 = vld [vmem:[%s3969_s0 + $0x40] sm:$0xff]  ;;  %v2362_v8 = vld [vmem:[%s3969_s0 + $0x38] sm:$0xff]  ;;  %v2367_v9 = vld [vmem:[%s3969_s0 + $0x30] sm:$0xff] }
   0x4   :  { %v2375_v10 = vld [vmem:[%s3969_s0 + $0x58] sm:$0xff]  ;;  %v2380_v11 = vld [vmem:[%s3969_s0 + $0x50] sm:$0xff]  ;;  %v2385_v12 = vld [vmem:[%s3969_s0 + $0x48] sm:$0xff] }
   0x5   :  { %v2393_v13 = vld [vmem:[%s3969_s0 + $0x70] sm:$0xff]  ;;  %v2398_v14 = vld [vmem:[%s3969_s0 + $0x68] sm:$0xff]  ;;  %v2403_v15 = vld [vmem:[%s3969_s0 + $0x60] sm:$0xff] }
   0x6   :  { %4000 = vst [vmem:[#allocation4_spill] sm:$0xff] %v2403_v15  ;;  %v2411_v16 = vld [vmem:[%s3970_s1 + $0x8] sm:$0xff]  ;;  %v2416_v17 = vld [vmem:[%s3970_s1] sm:$0xff]  ;;  %v2421_v18 = vld [vmem:[%s3969_s0 + $0x78] sm:$0xff] }
   0x7   :  { %v2429_v19 = vld [vmem:[%s3970_s1 + $0x20] sm:$0xff]  ;;  %v2434_v20 = vld [vmem:[%s3970_s1 + $0x18] sm:$0xff]  ;;  %v2439_v21 = vld [vmem:[%s3970_s1 + $0x10] sm:$0xff] }
   0x8   :  { %v2447_v22 = vld [vmem:[%s3970_s1 + $0x38] sm:$0xff]  ;;  %v2452_v23 = vld [vmem:[%s3970_s1 + $0x30] sm:$0xff]  ;;  %v2457_v24 = vld [vmem:[%s3970_s1 + $0x28] sm:$0xff] }
   0x9   :  { %v2465_v25 = vld [vmem:[%s3970_s1 + $0x50] sm:$0xff]  ;;  %v2470_v26 = vld [vmem:[%s3970_s1 + $0x48] sm:$0xff]  ;;  %v2475_v27 = vld [vmem:[%s3970_s1 + $0x40] sm:$0xff] }
   0xa   :  { %78 = vperm.xlu2 %2099, %v2339_v4   ;;  %4001 = vst [vmem:[#allocation5_spill] sm:$0xff] %v2475_v27  ;;  %v2483_v28 = vld [vmem:[%s3970_s1 + $0x68] sm:$0xff]  ;;  %v2488_v29 = vld [vmem:[%s3970_s1 + $0x60] sm:$0xff]  ;;  %v2493_v30 = vld [vmem:[%s3970_s1 + $0x58] sm:$0xff] }
   0xb   :  { %72 = vperm.xlu1 %2098, %v2344_v5   ;;  %66 = vperm.xlu0 %2097, %v2349_v6   ;;  %4002 = vst [vmem:[#allocation6_spill] sm:$0xff] %v2488_v29  ;;  %v2501_v31 = vld [vmem:[%s3970_s1 + $0x78] sm:$0xff]  ;;  %v2506_v32 = vld [vmem:[%s3970_s1 + $0x70] sm:$0xff] }
   0xc   :  { %4003 = vst [vmem:[#allocation7_spill] sm:$0xff] %v2501_v31 }
  0x12   :  { %87 = vperm.xlu2 %2099, %v2357_v7  }
  0x13   :  { %84 = vperm.xlu1 %2098, %v2362_v8   ;;  %81 = vperm.xlu0 %2097, %v2367_v9  }
  0x1a   :  { %96 = vperm.xlu2 %2099, %v2375_v10  }
  0x1b   :  { %93 = vperm.xlu1 %2098, %v2380_v11   ;;  %90 = vperm.xlu0 %2097, %v2385_v12  }
  0x22   :  { %105 = vperm.xlu2 %2099, %v2393_v13  }
  0x23   :  { %102 = vperm.xlu1 %2098, %v2398_v14   ;;  %99 = vperm.xlu0 %2097, %v2403_v15  }
  0x2a   :  { %133 = vperm.xlu2 %2099, %v2411_v16  }
  0x2b   :  { %128 = vperm.xlu1 %2098, %v2416_v17   ;;  %108 = vperm.xlu0 %2097, %v2421_v18  }
  0x32   :  { %148 = vperm.xlu2 %2099, %v2429_v19  }
  0x33   :  { %143 = vperm.xlu1 %2098, %v2434_v20   ;;  %138 = vperm.xlu0 %2097, %v2439_v21  }
  0x3a   :  { %163 = vperm.xlu2 %2099, %v2447_v22  }
  0x3b   :  { %158 = vperm.xlu1 %2098, %v2452_v23   ;;  %153 = vperm.xlu0 %2097, %v2457_v24  }
  0x42   :  { %178 = vperm.xlu2 %2099, %v2465_v25  }
  0x43   :  { %173 = vperm.xlu1 %2098, %v2470_v26   ;;  %168 = vperm.xlu0 %2097, %v2475_v27  }
  0x4a   :  { %193 = vperm.xlu2 %2099, %v2483_v28  }
  0x4b   :  { %188 = vperm.xlu1 %2098, %v2488_v29   ;;  %183 = vperm.xlu0 %2097, %v2493_v30  }
  0x52   :  { %2100 = vset.pattern.permute.xlu2 %v2268_v33 }
  0x53   :  { %203 = vperm.xlu1 %2098, %v2501_v31   ;;  %198 = vperm.xlu0 %2097, %v2506_v32  }
  0x54   :  { %239 = vperm.xlu2 %2100, %v2330_v3  }
  0x5b   :  { %2102 = vset.pattern.permute.xlu1 %v2268_v33  ;;  %2101 = vset.pattern.permute.xlu0 %v2268_v33 }
  0x5c   :  { %245 = vperm.xlu1 %2102, %v2325_v2   ;;  %248 = vperm.xlu2 %2100, %v2344_v5   ;;  %v2513_v34 = vpop.permute.xlu2 %75 }
  0x5d   :  { %4004 = vst [vmem:[#allocation8_spill] sm:$0xff] %v2513_v34  ;;  %242 = vperm.xlu0 %2101, %v2349_v6  }
  0x64   :  { %251 = vperm.xlu1 %2102, %v2320_v1   ;;  %254 = vperm.xlu2 %2100, %v2339_v4   ;;  %v2518_v35 = vpop.permute.xlu2 %78 }
  0x65   :  { %257 = vperm.xlu0 %2101, %v2367_v9  }
  0x6c   :  { %260 = vperm.xlu1 %2102, %v2362_v8   ;;  %263 = vperm.xlu2 %2100, %v2357_v7   ;;  %v2523_v36 = vpop.permute.xlu2 %87 }
  0x6d   :  { %266 = vperm.xlu0 %2101, %v2385_v12  }
  0x74   :  { %269 = vperm.xlu1 %2102, %v2380_v11   ;;  %272 = vperm.xlu2 %2100, %v2375_v10   ;;  %v2528_v37 = vpop.permute.xlu2 %96 }
  0x75   :  { %275 = vperm.xlu0 %2101, %v2403_v15   ;;  %v2531_v38 = vpop.permute.xlu1 %69  ;;  %v2533_v39 = vpop.permute.xlu0 %63 }
  0x76   :  { %4005 = vst [vmem:[#allocation9_spill] sm:$0xff] %v2533_v39 }
  0x7c   :  { %278 = vperm.xlu1 %2102, %v2398_v14   ;;  %281 = vperm.xlu2 %2100, %v2393_v13   ;;  %v2537_v40 = vpop.permute.xlu2 %105 }
  0x7d   :  { %284 = vperm.xlu0 %2101, %v2421_v18   ;;  %v2540_v41 = vpop.permute.xlu1 %72  ;;  %v2542_v42 = vpop.permute.xlu0 %66 }
  0x7e   :  { %4006 = vst [vmem:[#allocation10_spill] sm:$0xff] %v2540_v41 }
  0x7f   :  { %4007 = vst [vmem:[#allocation11_spill] sm:$0xff] %v2542_v42 }
  0x84   :  { %303 = vperm.xlu1 %2102, %v2416_v17   ;;  %307 = vperm.xlu2 %2100, %v2411_v16   ;;  %v2546_v43 = vpop.permute.xlu2 %133 }
  0x85   :  { %4008 = vst [vmem:[#allocation12_spill] sm:$0xff] %v2546_v43  ;;  %311 = vperm.xlu0 %2101, %v2439_v21   ;;  %v2549_v44 = vpop.permute.xlu1 %84  ;;  %v2551_v45 = vpop.permute.xlu0 %81 }
  0x86   :  { %4009 = vst [vmem:[#allocation13_spill] sm:$0xff] %v2549_v44 }
  0x87   :  { %4010 = vst [vmem:[#allocation14_spill] sm:$0xff] %v2551_v45 }
  0x8c   :  { %315 = vperm.xlu1 %2102, %v2434_v20   ;;  %319 = vperm.xlu2 %2100, %v2429_v19   ;;  %v2555_v46 = vpop.permute.xlu2 %148 }
  0x8d   :  { %4011 = vst [vmem:[#allocation15_spill] sm:$0xff] %v2555_v46  ;;  %323 = vperm.xlu0 %2101, %v2457_v24   ;;  %v2558_v47 = vpop.permute.xlu1 %93  ;;  %v2560_v48 = vpop.permute.xlu0 %90 }
  0x8e   :  { %4012 = vst [vmem:[#allocation16_spill] sm:$0xff] %v2558_v47 }
  0x8f   :  { %4013 = vst [vmem:[#allocation17_spill] sm:$0xff] %v2560_v48 }
  0x94   :  { %327 = vperm.xlu1 %2102, %v2452_v23   ;;  %331 = vperm.xlu2 %2100, %v2447_v22   ;;  %v2564_v49 = vpop.permute.xlu2 %163 }
  0x95   :  { %4014 = vst [vmem:[#allocation18_spill] sm:$0xff] %v2564_v49  ;;  %335 = vperm.xlu0 %2101, %v2475_v27   ;;  %v2567_v50 = vpop.permute.xlu1 %102  ;;  %v2569_v51 = vpop.permute.xlu0 %99 }
  0x96   :  { %4015 = vst [vmem:[#allocation19_spill] sm:$0xff] %v2567_v50 }
  0x97   :  { %4016 = vst [vmem:[#allocation20_spill] sm:$0xff] %v2569_v51 }
  0x9c   :  { %339 = vperm.xlu1 %2102, %v2470_v26   ;;  %343 = vperm.xlu2 %2100, %v2465_v25   ;;  %v2573_v52 = vpop.permute.xlu2 %178 }
  0x9d   :  { %4017 = vst [vmem:[#allocation21_spill] sm:$0xff] %v2573_v52  ;;  %347 = vperm.xlu0 %2101, %v2493_v30   ;;  %v2576_v53 = vpop.permute.xlu1 %128  ;;  %v2578_v54 = vpop.permute.xlu0 %108 }
  0x9e   :  { %4018 = vst [vmem:[#allocation22_spill] sm:$0xff] %v2576_v53 }
  0x9f   :  { %4019 = vst [vmem:[#allocation23_spill] sm:$0xff] %v2578_v54 }
  0xa4   :  { %351 = vperm.xlu1 %2102, %v2488_v29   ;;  %355 = vperm.xlu2 %2100, %v2483_v28   ;;  %v2582_v55 = vpop.permute.xlu2 %193 }
  0xa5   :  { %4020 = vst [vmem:[#allocation24_spill] sm:$0xff] %v2582_v55  ;;  %359 = vperm.xlu0 %2101, %v2506_v32   ;;  %v2585_v56 = vpop.permute.xlu1 %143  ;;  %v2587_v57 = vpop.permute.xlu0 %138 }
  0xa6   :  { %4021 = vst [vmem:[#allocation25_spill] sm:$0xff] %v2585_v56 }
  0xac   :  { %363 = vperm.xlu1 %2102, %v2501_v31   ;;  %2103 = vset.pattern.permute.xlu2 %v2269_v58 }
  0xad   :  { %2104 = vset.pattern.permute.xlu0 %v2269_v58  ;;  %v2590_v59 = vpop.permute.xlu1 %158  ;;  %399 = vperm.xlu2 %2103, %v2330_v3   ;;  %v2593_v60 = vpop.permute.xlu0 %153 }
  0xae   :  { %4022 = vst [vmem:[#allocation26_spill] sm:$0xff] %v2590_v59  ;;  %402 = vperm.xlu0 %2104, %v2349_v6   ;;  %v2596_v61 = vpop.permute.xlu2 %239 }
  0xaf   :  { %4023 = vst [vmem:[#allocation27_spill] sm:$0xff] %v2596_v61 }
  0xb4   :  { %2105 = vset.pattern.permute.xlu1 %v2269_v58 }
  0xb5   :  { %405 = vperm.xlu1 %2105, %v2325_v2   ;;  %v2599_v62 = vpop.permute.xlu1 %173  ;;  %408 = vperm.xlu2 %2103, %v2344_v5   ;;  %v2602_v63 = vpop.permute.xlu0 %168 }
  0xb6   :  { %4024 = vst [vmem:[#allocation28_spill] sm:$0xff] %v2599_v62  ;;  %417 = vperm.xlu0 %2104, %v2367_v9   ;;  %v2605_v33 = vpop.permute.xlu2 %248 }
  0xb7   :  { %4025 = vst [vmem:[#allocation29_spill] sm:$0xff] %v2605_v33 }
  0xbd   :  { %411 = vperm.xlu1 %2105, %v2320_v1   ;;  %v2608_v0 = vpop.permute.xlu1 %188  ;;  %414 = vperm.xlu2 %2103, %v2339_v4   ;;  %v2611_v55 = vpop.permute.xlu0 %183 }
  0xbe   :  { %4026 = vst [vmem:[#allocation30_spill] sm:$0xff] %v2608_v0  ;;  %426 = vperm.xlu0 %2104, %v2385_v12   ;;  %v2614_v58 = vpop.permute.xlu2 %254 }
  0xc5   :  { %420 = vperm.xlu1 %2105, %v2362_v8   ;;  %v2617_v50 = vpop.permute.xlu1 %203  ;;  %423 = vperm.xlu2 %2103, %v2357_v7   ;;  %v2620_v52 = vpop.permute.xlu0 %198 }
  0xc6   :  { %4027 = vst [vmem:[#allocation31_spill] sm:$0xff] %v2617_v50  ;;  %435 = vperm.xlu0 %2104, %v2403_v15   ;;  %v2623_v47 = vpop.permute.xlu2 %263 }
  0xcd   :  { %429 = vperm.xlu1 %2105, %v2380_v11   ;;  %432 = vperm.xlu2 %2103, %v2375_v10  }
  0xce   :  { %444 = vperm.xlu0 %2104, %v2421_v18   ;;  %v2628_v54 = vpop.permute.xlu1 %245  ;;  %v2630_v46 = vpop.permute.xlu2 %272 }
  0xcf   :  { %v2632_v0 = vpop.permute.xlu0 %242 }
  0xd5   :  { %438 = vperm.xlu1 %2105, %v2398_v14   ;;  %441 = vperm.xlu2 %2103, %v2393_v13  }
  0xd6   :  { %471 = vperm.xlu0 %2104, %v2439_v21   ;;  %v2637_v50 = vpop.permute.xlu1 %251  ;;  %v2639_v34 = vpop.permute.xlu2 %281 }
  0xd7   :  { %4028 = vst [vmem:[#allocation32_spill] sm:$0xff] %v2637_v50  ;;  %v2641_v51 = vpop.permute.xlu0 %257 }
  0xd8   :  { %4029 = vst [vmem:[#allocation33_spill] sm:$0xff] %v2641_v51 }
  0xdd   :  { %463 = vperm.xlu1 %2105, %v2416_v17   ;;  %467 = vperm.xlu2 %2103, %v2411_v16  }
  0xde   :  { %483 = vperm.xlu0 %2104, %v2457_v24   ;;  %v2646_v49 = vpop.permute.xlu1 %260  ;;  %v2648_v44 = vpop.permute.xlu2 %307 }
  0xdf   :  { %4030 = vst [vmem:[#allocation34_spill] sm:$0xff] %v2646_v49  ;;  %v2650_v56 = vpop.permute.xlu0 %266 }
  0xe0   :  { %4031 = vst [vmem:[#allocation35_spill] sm:$0xff] %v2648_v44 }
  0xe1   :  { %4032 = vst [vmem:[#allocation36_spill] sm:$0xff] %v2650_v56 }
  0xe5   :  { %475 = vperm.xlu1 %2105, %v2434_v20   ;;  %479 = vperm.xlu2 %2103, %v2429_v19  }
  0xe6   :  { %495 = vperm.xlu0 %2104, %v2475_v27   ;;  %v2655_v50 = vpop.permute.xlu1 %269  ;;  %v2657_v41 = vpop.permute.xlu2 %319 }
  0xe7   :  { %4033 = vst [vmem:[#allocation37_spill] sm:$0xff] %v2655_v50  ;;  %v2659_v33 = vpop.permute.xlu0 %275 }
  0xe8   :  { %4034 = vst [vmem:[#allocation38_spill] sm:$0xff] %v2657_v41 }
  0xe9   :  { %4035 = vst [vmem:[#allocation39_spill] sm:$0xff] %v2659_v33 }
  0xed   :  { %487 = vperm.xlu1 %2105, %v2452_v23   ;;  %491 = vperm.xlu2 %2103, %v2447_v22  }
  0xee   :  { %507 = vperm.xlu0 %2104, %v2493_v30   ;;  %v2664_v49 = vpop.permute.xlu1 %278  ;;  %v2666_v53 = vpop.permute.xlu2 %331 }
  0xef   :  { %4036 = vst [vmem:[#allocation40_spill] sm:$0xff] %v2664_v49  ;;  %v2668_v61 = vpop.permute.xlu0 %284  ;;  %v2270_v49 = vmov 3  }
  0xf0   :  { %4037 = vst [vmem:[#allocation41_spill] sm:$0xff] %v2666_v53 }
  0xf1   :  { %4038 = vst [vmem:[#allocation42_spill] sm:$0xff] %v2668_v61 }
  0xf5   :  { %499 = vperm.xlu1 %2105, %v2470_v26   ;;  %503 = vperm.xlu2 %2103, %v2465_v25  }
  0xf6   :  { %519 = vperm.xlu0 %2104, %v2506_v32   ;;  %v2673_v50 = vpop.permute.xlu1 %303  ;;  %v2675_v41 = vpop.permute.xlu2 %343 }
  0xf7   :  { %4039 = vst [vmem:[#allocation43_spill] sm:$0xff] %v2673_v50  ;;  %v2677_v33 = vpop.permute.xlu0 %311 }
  0xf8   :  { %4040 = vst [vmem:[#allocation44_spill] sm:$0xff] %v2675_v41 }
  0xfd   :  { %511 = vperm.xlu1 %2105, %v2488_v29   ;;  %515 = vperm.xlu2 %2103, %v2483_v28  }
  0xfe   :  { %2107 = vset.pattern.permute.xlu0 %v2270_v49  ;;  %v2681_v53 = vpop.permute.xlu1 %315  ;;  %v2683_v61 = vpop.permute.xlu2 %355 }
  0xff   :  { %4041 = vst [vmem:[#allocation45_spill] sm:$0xff] %v2681_v53  ;;  %562 = vperm.xlu0 %2107, %v2349_v6   ;;  %v2686_v39 = vpop.permute.xlu0 %323 }
 0x100   :  { %4042 = vst [vmem:[#allocation46_spill] sm:$0xff] %v2683_v61 }
 0x105   :  { %523 = vperm.xlu1 %2105, %v2501_v31   ;;  %2106 = vset.pattern.permute.xlu2 %v2270_v49 }
 0x106   :  { %v2689_v41 = vpop.permute.xlu1 %327  ;;  %559 = vperm.xlu2 %2106, %v2330_v3  }
 0x107   :  { %4043 = vst [vmem:[#allocation47_spill] sm:$0xff] %v2689_v41  ;;  %577 = vperm.xlu0 %2107, %v2367_v9   ;;  %v2693_v50 = vpop.permute.xlu0 %335  ;;  %v2695_v62 = vpop.permute.xlu2 %399 }
 0x108   :  { %4044 = vst [vmem:[#allocation48_spill] sm:$0xff] %v2695_v62 }
 0x10d   :  { %2108 = vset.pattern.permute.xlu1 %v2270_v49 }
 0x10e   :  { %565 = vperm.xlu1 %2108, %v2325_v2   ;;  %v2698_v61 = vpop.permute.xlu1 %339  ;;  %568 = vperm.xlu2 %2106, %v2344_v5  }
 0x10f   :  { %4045 = vst [vmem:[#allocation49_spill] sm:$0xff] %v2698_v61  ;;  %586 = vperm.xlu0 %2107, %v2385_v12   ;;  %v2702_v53 = vpop.permute.xlu0 %347  ;;  %v2704_v48 = vpop.permute.xlu2 %408 }
 0x110   :  { %4046 = vst [vmem:[#allocation50_spill] sm:$0xff] %v2704_v48 }
 0x116   :  { %571 = vperm.xlu1 %2108, %v2320_v1   ;;  %v2707_v56 = vpop.permute.xlu1 %351  ;;  %574 = vperm.xlu2 %2106, %v2339_v4  }
 0x117   :  { %4047 = vst [vmem:[#allocation51_spill] sm:$0xff] %v2707_v56  ;;  %595 = vperm.xlu0 %2107, %v2403_v15   ;;  %v2711_v49 = vpop.permute.xlu0 %359  ;;  %v2713_v62 = vpop.permute.xlu2 %414 }
 0x11e   :  { %580 = vperm.xlu1 %2108, %v2362_v8   ;;  %v2716_v61 = vpop.permute.xlu1 %363  ;;  %583 = vperm.xlu2 %2106, %v2357_v7  }
 0x11f   :  { %4048 = vst [vmem:[#allocation52_spill] sm:$0xff] %v2716_v61  ;;  %604 = vperm.xlu0 %2107, %v2421_v18   ;;  %v2720_v48 = vpop.permute.xlu2 %423 }
 0x120   :  { %v2722_v59 = vpop.permute.xlu0 %402 }
 0x121   :  { %4049 = vst [vmem:[#allocation53_spill] sm:$0xff] %v2722_v59 }
 0x126   :  { %589 = vperm.xlu1 %2108, %v2380_v11   ;;  %592 = vperm.xlu2 %2106, %v2375_v10  }
 0x127   :  { %631 = vperm.xlu0 %2107, %v2439_v21   ;;  %v2727_v56 = vpop.permute.xlu1 %405  ;;  %v2729_v41 = vpop.permute.xlu2 %432 }
 0x128   :  { %v2731_v45 = vpop.permute.xlu0 %417 }
 0x129   :  { %4050 = vst [vmem:[#allocation54_spill] sm:$0xff] %v2731_v45 }
 0x12e   :  { %598 = vperm.xlu1 %2108, %v2398_v14   ;;  %601 = vperm.xlu2 %2106, %v2393_v13  }
 0x12f   :  { %643 = vperm.xlu0 %2107, %v2457_v24   ;;  %v2736_v61 = vpop.permute.xlu1 %411  ;;  %v2738_v51 = vpop.permute.xlu2 %441 }
 0x130   :  { %4051 = vst [vmem:[#allocation55_spill] sm:$0xff] %v2736_v61  ;;  %v2740_v43 = vpop.permute.xlu0 %426 }
 0x131   :  { %4052 = vst [vmem:[#allocation56_spill] sm:$0xff] %v2740_v43 }
 0x136   :  { %623 = vperm.xlu1 %2108, %v2416_v17   ;;  %627 = vperm.xlu2 %2106, %v2411_v16  }
 0x137   :  { %655 = vperm.xlu0 %2107, %v2475_v27   ;;  %v2745_v44 = vpop.permute.xlu1 %420  ;;  %v2747_v45 = vpop.permute.xlu2 %467 }
 0x138   :  { %4053 = vst [vmem:[#allocation57_spill] sm:$0xff] %v2745_v44  ;;  %v2749_v59 = vpop.permute.xlu0 %435 }
 0x139   :  { %4054 = vst [vmem:[#allocation58_spill] sm:$0xff] %v2747_v45 }
 0x13a   :  { %4055 = vst [vmem:[#allocation59_spill] sm:$0xff] %v2749_v59 }
 0x13e   :  { %635 = vperm.xlu1 %2108, %v2434_v20   ;;  %639 = vperm.xlu2 %2106, %v2429_v19  }
 0x13f   :  { %667 = vperm.xlu0 %2107, %v2493_v30   ;;  %v2754_v61 = vpop.permute.xlu1 %429  ;;  %v2756_v43 = vpop.permute.xlu2 %479 }
 0x140   :  { %4056 = vst [vmem:[#allocation60_spill] sm:$0xff] %v2754_v61  ;;  %v2758_v42 = vpop.permute.xlu0 %444  ;;  %v3984_v61 = vmov 4  }
 0x141   :  { %4057 = vst [vmem:[#allocation61_spill] sm:$0xff] %v2756_v43 }
 0x142   :  { %4058 = vst [vmem:[#allocation62_spill] sm:$0xff] %v2758_v42 }
 0x146   :  { %647 = vperm.xlu1 %2108, %v2452_v23   ;;  %651 = vperm.xlu2 %2106, %v2447_v22  }
 0x147   :  { %679 = vperm.xlu0 %2107, %v2506_v32   ;;  %v2763_v44 = vpop.permute.xlu1 %438  ;;  %v2765_v59 = vpop.permute.xlu2 %491 }
 0x148   :  { %4059 = vst [vmem:[#allocation63_spill] sm:$0xff] %v2763_v44  ;;  %v2767_v27 = vpop.permute.xlu0 %471 }
 0x149   :  { %4060 = vst [vmem:[#allocation64_spill] sm:$0xff] %v2765_v59 }
 0x14e   :  { %659 = vperm.xlu1 %2108, %v2470_v26   ;;  %663 = vperm.xlu2 %2106, %v2465_v25  }
 0x14f   :  { %2110 = vset.pattern.permute.xlu0 %v3984_v61  ;;  %v2772_v42 = vpop.permute.xlu1 %463  ;;  %v2774_v43 = vpop.permute.xlu2 %503 }
 0x150   :  { %4061 = vst [vmem:[#allocation65_spill] sm:$0xff] %v2772_v42  ;;  %722 = vperm.xlu0 %2110, %v2349_v6   ;;  %v2777_v32 = vpop.permute.xlu0 %483 }
 0x151   :  { %4062 = vst [vmem:[#allocation66_spill] sm:$0xff] %v2774_v43 }
 0x156   :  { %671 = vperm.xlu1 %2108, %v2488_v29   ;;  %675 = vperm.xlu2 %2106, %v2483_v28  }
 0x157   :  { %v2781_v44 = vpop.permute.xlu1 %475  ;;  %v2783_v59 = vpop.permute.xlu2 %515 }
 0x158   :  { %4063 = vst [vmem:[#allocation67_spill] sm:$0xff] %v2781_v44  ;;  %737 = vperm.xlu0 %2110, %v2367_v9   ;;  %v2786_v45 = vpop.permute.xlu0 %495 }
 0x159   :  { %4064 = vst [vmem:[#allocation68_spill] sm:$0xff] %v2783_v59 }
 0x15e   :  { %683 = vperm.xlu1 %2108, %v2501_v31   ;;  %2109 = vset.pattern.permute.xlu2 %v3984_v61 }
 0x15f   :  { %v2790_v43 = vpop.permute.xlu1 %487  ;;  %719 = vperm.xlu2 %2109, %v2330_v3  }
 0x160   :  { %4065 = vst [vmem:[#allocation69_spill] sm:$0xff] %v2790_v43  ;;  %746 = vperm.xlu0 %2110, %v2385_v12   ;;  %v2794_v42 = vpop.permute.xlu0 %507  ;;  %v2796_v29 = vpop.permute.xlu2 %559 }
 0x161   :  { %4066 = vst [vmem:[#allocation70_spill] sm:$0xff] %v2796_v29 }
 0x166   :  { %2111 = vset.pattern.permute.xlu1 %v3984_v61 }
 0x167   :  { %725 = vperm.xlu1 %2111, %v2325_v2   ;;  %v2800_v9 = vpop.permute.xlu1 %499  ;;  %728 = vperm.xlu2 %2109, %v2344_v5  }
 0x168   :  { %4067 = vst [vmem:[#allocation71_spill] sm:$0xff] %v2800_v9  ;;  %755 = vperm.xlu0 %2110, %v2403_v15   ;;  %v2804_v59 = vpop.permute.xlu0 %519  ;;  %v2806_v44 = vpop.permute.xlu2 %568 }
 0x169   :  { %4068 = vst [vmem:[#allocation72_spill] sm:$0xff] %v2806_v44 }
 0x16f   :  { %731 = vperm.xlu1 %2111, %v2320_v1   ;;  %v2809_v31 = vpop.permute.xlu1 %511  ;;  %734 = vperm.xlu2 %2109, %v2339_v4  }
 0x170   :  { %4069 = vst [vmem:[#allocation73_spill] sm:$0xff] %v2809_v31  ;;  %764 = vperm.xlu0 %2110, %v2421_v18   ;;  %v2813_v61 = vpop.permute.xlu2 %574 }
 0x171   :  { %v2815_v29 = vpop.permute.xlu0 %562 }
 0x177   :  { %740 = vperm.xlu1 %2111, %v2362_v8   ;;  %v2818_v9 = vpop.permute.xlu1 %523  ;;  %743 = vperm.xlu2 %2109, %v2357_v7  }
 0x178   :  { %4070 = vst [vmem:[#allocation74_spill] sm:$0xff] %v2818_v9  ;;  %791 = vperm.xlu0 %2110, %v2439_v21   ;;  %v2822_v44 = vpop.permute.xlu2 %583  ;;  %v3989_v9 = vmov 6  }
 0x179   :  { %v2824_v43 = vpop.permute.xlu0 %577 }
 0x17a   :  { %4071 = vst [vmem:[#allocation75_spill] sm:$0xff] %v2824_v43 }
 0x17f   :  { %749 = vperm.xlu1 %2111, %v2380_v11   ;;  %752 = vperm.xlu2 %2109, %v2375_v10   ;;  %v60_v11 = vlaneseq }
 0x180   :  { %803 = vperm.xlu0 %2110, %v2457_v24   ;;  %v566_v18 = vpop.permute.xlu1 %565  ;;  %v2829_v31 = vpop.permute.xlu2 %592 }
 0x181   :  { %v2831_v4 = vpop.permute.xlu0 %586 }
 0x182   :  { %4072 = vst [vmem:[#allocation76_spill] sm:$0xff] %v2831_v4 }
 0x187   :  { %758 = vperm.xlu1 %2111, %v2398_v14   ;;  %761 = vperm.xlu2 %2109, %v2393_v13   ;;  %v2849_v13 = vand.u32 127, %v60_v11 }
 0x188   :  { %2116 = vset.pattern.permute.xlu0 %v3989_v9  ;;  %v2836_v15 = vpop.permute.xlu1 %571  ;;  %v2838_v43 = vpop.permute.xlu2 %601 }
 0x189   :  { %4073 = vst [vmem:[#allocation77_spill] sm:$0xff] %v2836_v15  ;;  %1107 = vperm.xlu0 %2116, %v2411_v16   ;;  %v2841_v10 = vpop.permute.xlu0 %595  ;;  %vm288_vm0 = vcmp.eq.s32.totalorder %v2628_v54, %v2849_v13  ;;  %vm112_vm1 = vcmp.eq.s32.totalorder %v2531_v38, %v2849_v13  ;;  %vm448_vm2 = vcmp.eq.s32.totalorder %v2727_v56, %v2849_v13 }
 0x18a   :  { %4074 = vst [vmem:[#allocation78_spill] sm:$0xff] %v2841_v10  ;;  %v368_v15 = vsel %vm288_vm0, %v2677_v33, 0.0  ;;  %v208_v10 = vsel %vm112_vm1, %v2587_v57, 0.0  ;;  %v528_v11 = vsel %vm448_vm2, %v2767_v27, 0.0  ;;  %vm608_vm3 = vcmp.eq.s32.totalorder %v566_v18, %v2849_v13 }
 0x18b   :  { %vm291_vm4 = vcmp.eq.s32.totalorder %v2614_v58, %v2849_v13  ;;  %vm115_vm5 = vcmp.eq.s32.totalorder %v2518_v35, %v2849_v13  ;;  %vm451_vm6 = vcmp.eq.s32.totalorder %v2713_v62, %v2849_v13  ;;  %vm611_vm7 = vcmp.eq.s32.totalorder %v2813_v61, %v2849_v13 }
 0x18c   :  { %v531_v57 = vsel %vm451_vm6, %v2777_v32, 0.0  ;;  %vm294_vm8 = vcmp.eq.s32.totalorder %v2623_v47, %v2849_v13  ;;  %vm118_vm9 = vcmp.eq.s32.totalorder %v2523_v36, %v2849_v13  ;;  %vm454_vm10 = vcmp.eq.s32.totalorder %v2720_v48, %v2849_v13 }
 0x18d   :  { %v534_v32 = vsel %vm454_vm10, %v2786_v45, 0.0  ;;  %vm614_vm11 = vcmp.eq.s32.totalorder %v2822_v44, %v2849_v13  ;;  %vm297_vm12 = vcmp.eq.s32.totalorder %v2630_v46, %v2849_v13  ;;  %vm121_vm13 = vcmp.eq.s32.totalorder %v2528_v37, %v2849_v13 }
 0x18e   :  { %vm457_vm14 = vcmp.eq.s32.totalorder %v2729_v41, %v2849_v13  ;;  %vm617_vm15 = vcmp.eq.s32.totalorder %v2829_v31, %v2849_v13  ;;  %vm300_vm0 = vcmp.eq.s32.totalorder %v2639_v34, %v2849_v13  ;;  %vm124_vm1 = vcmp.eq.s32.totalorder %v2537_v40, %v2849_v13 }
 0x18f   :  { %783 = vperm.xlu1 %2111, %v2416_v17   ;;  %787 = vperm.xlu2 %2109, %v2411_v16   ;;  %vm460_vm2 = vcmp.eq.s32.totalorder %v2738_v51, %v2849_v13  ;;  %v4080_v34 = vmov 6  }
 0x190   :  { %v2845_v4 = vpop.permute.xlu1 %580  ;;  %v2847_v14 = vpop.permute.xlu2 %627  ;;  %v540_v31 = vsel %vm460_vm2, %v2804_v59, 0.0 }
 0x191   :  { %4075 = vst [vmem:[#allocation79_spill] sm:$0xff] %v2845_v4  ;;  %1048 = vperm.xlu0 %2116, %v2344_v5   ;;  %v2852_v9 = vpop.permute.xlu0 %604  ;;  %v384_v4 = vadd.f32 %v368_v15, %v208_v10  ;;  %v371_v15 = vsel %vm291_vm4, %v2686_v39, 0.0  ;;  %vm287_vm4 = vcmp.eq.s32.totalorder %v2632_v0, %v2849_v13  ;;  %v4086_v0 = vld [vmem:[#allocation12_spill] sm:$0xff] }
 0x192   :  { %4076 = vst [vmem:[#allocation80_spill] sm:$0xff] %v2852_v9 }
 0x193   :  { %v544_v33 = vadd.f32 %v528_v11, %v384_v4  ;;  %v211_v4 = vsel %vm115_vm5, %v2593_v60, 0.0 }
 0x194   :  { %v387_v18 = vadd.f32 %v371_v15, %v211_v4  ;;  %v220_v15 = vsel %vm124_vm1, %v2620_v52, 0.0 }
 0x196   :  { %v547_v39 = vadd.f32 %v531_v57, %v387_v18 }
 0x197   :  { %795 = vperm.xlu1 %2111, %v2434_v20   ;;  %799 = vperm.xlu2 %2109, %v2429_v19  }
 0x198   :  { %v2865_v9 = vpop.permute.xlu1 %589  ;;  %v2867_v54 = vpop.permute.xlu2 %639 }
 0x199   :  { %1127 = vperm.xlu0 %2116, %v2452_v23   ;;  %v632_v38 = vpop.permute.xlu0 %631 }
 0x19a   :  { %v688_v56 = vsel %vm608_vm3, %v632_v38, 0.0  ;;  %v3991_v38 = vmov 5   ;;  %vm620_vm3 = vcmp.eq.s32.totalorder %v2838_v43, %v2849_v13 }
 0x19b   :  { %v2873_v27 = vadd.f32 %v688_v56, %v544_v33  ;;  %v537_v33 = vsel %vm457_vm14, %v2794_v42, 0.0  ;;  %v380_v56 = vsel %vm300_vm0, %v2711_v49, 0.0 }
 0x19c   :  { %v396_v4 = vadd.f32 %v380_v56, %v220_v15 }
 0x19e   :  { %v556_v18 = vadd.f32 %v540_v31, %v396_v4 }
 0x19f   :  { %807 = vperm.xlu1 %2111, %v2452_v23   ;;  %811 = vperm.xlu2 %2109, %v2447_v22   ;;  %v374_v23 = vsel %vm294_vm8, %v2693_v50, 0.0 }
 0x1a0   :  { %v2884_v58 = vpop.permute.xlu1 %598  ;;  %v2886_v10 = vpop.permute.xlu2 %651 }
 0x1a1   :  { %4077 = vst [vmem:[#allocation81_spill] sm:$0xff] %v2884_v58  ;;  %1063 = vperm.xlu0 %2116, %v2357_v7   ;;  %v644_v35 = vpop.permute.xlu0 %643  ;;  %v214_v7 = vsel %vm118_vm9, %v2602_v63, 0.0  ;;  %v217_v63 = vsel %vm121_vm13, %v2611_v55, 0.0 }
 0x1a2   :  { %v691_v62 = vsel %vm611_vm7, %v644_v35, 0.0  ;;  %v390_v61 = vadd.f32 %v374_v23, %v214_v7  ;;  %vm607_vm7 = vcmp.eq.s32.totalorder %v2815_v29, %v2849_v13 }
 0x1a3   :  { %v2893_v60 = vadd.f32 %v691_v62, %v547_v39  ;;  %v3994_v62 = vmov 7  }
 0x1a4   :  { %v550_v50 = vadd.f32 %v534_v32, %v390_v61 }
 0x1a7   :  { %819 = vperm.xlu1 %2111, %v2470_v26   ;;  %823 = vperm.xlu2 %2109, %v2465_v25   ;;  %v377_v26 = vsel %vm297_vm12, %v2702_v53, 0.0 }
 0x1a8   :  { %v2904_v47 = vpop.permute.xlu1 %623  ;;  %v2906_v11 = vpop.permute.xlu2 %663  ;;  %v393_v44 = vadd.f32 %v377_v26, %v217_v63 }
 0x1a9   :  { %1147 = vperm.xlu0 %2116, %v2493_v30   ;;  %v656_v36 = vpop.permute.xlu0 %655 }
 0x1aa   :  { %v694_v48 = vsel %vm614_vm11, %v656_v36, 0.0  ;;  %v553_v53 = vadd.f32 %v537_v33, %v393_v44  ;;  %v4087_v33 = vld [vmem:[#allocation58_spill] sm:$0xff] }
 0x1ab   :  { %v2913_v45 = vadd.f32 %v694_v48, %v550_v50 }
 0x1af   :  { %2112 = vset.pattern.permute.xlu1 %v3991_v38  ;;  %2113 = vset.pattern.permute.xlu2 %v3991_v38 }
 0x1b0   :  { %v2924_v46 = vpop.permute.xlu1 %635  ;;  %879 = vperm.xlu1 %2112, %v2330_v3   ;;  %882 = vperm.xlu2 %2113, %v2349_v6   ;;  %v2928_v37 = vpop.permute.xlu2 %675 }
 0x1b1   :  { %4078 = vst [vmem:[#allocation82_spill] sm:$0xff] %v2928_v37  ;;  %2147 = vset.pattern.permute.xlu0 %v3991_v38  ;;  %v668_v41 = vpop.permute.xlu0 %667 }
 0x1b2   :  { %v697_v42 = vsel %vm617_vm15, %v668_v41, 0.0  ;;  %943 = vperm.xlu0 %2147, %v2416_v17   ;;  %v687_v41 = vsel %vm607_vm7, %v2847_v14, 0.0 }
 0x1b3   :  { %v2936_v55 = vadd.f32 %v697_v42, %v553_v53 }
 0x1b5   :  { %4079 = vst [vmem:[#allocation83_spill] sm:$0xff] %v2936_v55 }
 0x1b8   :  { %v2945_v57 = vpop.permute.xlu1 %647  ;;  %947 = vperm.xlu1 %2112, %v2411_v16   ;;  %2114 = vset.pattern.permute.xlu2 %v4080_v34 }
 0x1b9   :  { %v680_v49 = vpop.permute.xlu0 %679  ;;  %1039 = vperm.xlu2 %2114, %v2330_v3   ;;  %v2952_v40 = vpop.permute.xlu2 %719 }
 0x1ba   :  { %v700_v51 = vsel %vm620_vm3, %v680_v49, 0.0  ;;  %885 = vperm.xlu0 %2147, %v2325_v2  }
 0x1bb   :  { %v2955_v52 = vadd.f32 %v700_v51, %v556_v18 }
 0x1bd   :  { %4081 = vst [vmem:[#allocation84_spill] sm:$0xff] %v2955_v52  ;;  %v4116_v52 = vld [vmem:[#allocation48_spill] sm:$0xff] }
 0x1be   :  { %vm446_vm7 = vcmp.eq.s32.totalorder %v4116_v52, %v2849_v13 }
 0x1c0   :  { %v2957_v59 = vpop.permute.xlu1 %659  ;;  %2115 = vset.pattern.permute.xlu1 %v4080_v34 }
 0x1c1   :  { %1042 = vperm.xlu1 %2115, %v2349_v6   ;;  %1103 = vperm.xlu2 %2114, %v2416_v17   ;;  %v2962_v39 = vpop.permute.xlu2 %728 }
 0x1c2   :  { %963 = vperm.xlu0 %2147, %v2457_v24   ;;  %v723_v43 = vpop.permute.xlu0 %722 }
 0x1c3   :  { %vm767_vm8 = vcmp.eq.s32.totalorder %v723_v43, %v2849_v13 }
 0x1c8   :  { %v2965_v35 = vpop.permute.xlu1 %671 }
 0x1c9   :  { %2117 = vset.pattern.permute.xlu1 %v3994_v62  ;;  %2118 = vset.pattern.permute.xlu2 %v3994_v62  ;;  %v735_v23 = vpop.permute.xlu2 %734 }
 0x1ca   :  { %900 = vperm.xlu0 %2147, %v2362_v8   ;;  %v2970_v7 = vpop.permute.xlu0 %737  ;;  %1199 = vperm.xlu1 %2117, %v2330_v3   ;;  %vm771_vm10 = vcmp.eq.s32.totalorder %v735_v23, %v2849_v13 }
 0x1cb   :  { %1202 = vperm.xlu2 %2118, %v2349_v6   ;;  %v4082_v6 = vld [vmem:[#allocation11_spill] sm:$0xff]  ;;  %vm772_vm0 = vcmp.eq.s32.totalorder %v2970_v7, %v2849_v13  ;;  %v4104_v7 = vld [vmem:[#allocation49_spill] sm:$0xff] }
 0x1cc   :  { %vm111_vm5 = vcmp.eq.s32.totalorder %v4082_v6, %v2849_v13 }
 0x1cd   :  { %v207_v63 = vsel %vm111_vm5, %v4086_v0, 0.0  ;;  %v4095_v0 = vld [vmem:[#allocation47_spill] sm:$0xff] }
 0x1d0   :  { %v2974_v32 = vpop.permute.xlu1 %683 }
 0x1d1   :  { %v2976_v61 = vpop.permute.xlu2 %743 }
 0x1d2   :  { %983 = vperm.xlu0 %2147, %v2465_v25   ;;  %v2979_v50 = vpop.permute.xlu0 %746  ;;  %1263 = vperm.xlu1 %2117, %v2416_v17  }
 0x1d3   :  { %1267 = vperm.xlu2 %2118, %v2411_v16   ;;  %v4083_v16 = vld [vmem:[#allocation53_spill] sm:$0xff] }
 0x1d4   :  { %vm447_vm6 = vcmp.eq.s32.totalorder %v4083_v16, %v2849_v13 }
 0x1d5   :  { %v527_v44 = vsel %vm447_vm6, %v4087_v33, 0.0 }
 0x1d9   :  { %v726_v36 = vpop.permute.xlu1 %725  ;;  %v2983_v8 = vpop.permute.xlu2 %752 }
 0x1da   :  { %995 = vperm.xlu0 %2147, %v2483_v28   ;;  %v2986_v3 = vpop.permute.xlu0 %755  ;;  %2119 = vset.pattern.permute.xlu1 %v3991_v38  ;;  %v4085_v28 = vld [vmem:[#allocation35_spill] sm:$0xff]  ;;  %vm768_vm9 = vcmp.eq.s32.totalorder %v726_v36, %v2849_v13 }
 0x1db   :  { %2120 = vset.pattern.permute.xlu2 %v3991_v38  ;;  %888 = vperm.xlu1 %2119, %v2344_v5   ;;  %v367_v48 = vsel %vm287_vm4, %v4085_v28, 0.0  ;;  %v4091_v28 = vld [vmem:[#allocation3_spill] sm:$0xff]  ;;  %vm775_vm4 = vcmp.eq.s32.totalorder %v2979_v50, %v2849_v13  ;;  %v4109_v50 = vld [vmem:[#allocation6_spill] sm:$0xff] }
 0x1dc   :  { %951 = vperm.xlu2 %2120, %v2439_v21   ;;  %v383_v53 = vadd.f32 %v367_v48, %v207_v63 }
 0x1de   :  { %v543_v42 = vadd.f32 %v527_v44, %v383_v53  ;;  %v2064_v44 = vld [vmem:[%s3971_s2 + $0x38] sm:$0xff]  ;;  %v4096_v53 = vld [vmem:[#allocation75_spill] sm:$0xff] }
 0x1df   :  { %vm612_vm14 = vcmp.eq.s32.totalorder %v4096_v53, %v2849_v13  ;;  %1430 = vmatpush.bf16.msra.mxu0 %v2064_v44  ;;  %2073 = vmatpush.bf16.msra.mxu3 %v2064_v44 }
 0x1e0   :  { %v703_v56 = vadd.f32 %v687_v41, %v543_v42  ;;  %v4097_v41 = vmov 4  }
 0x1e1   :  { %v2998_v17 = vpop.permute.xlu1 %731  ;;  %v3000_v25 = vpop.permute.xlu2 %761 }
 0x1e2   :  { %4084 = vst [vmem:[#allocation11_spill] sm:$0xff] %v3000_v25  ;;  %2153 = vset.pattern.permute.xlu0 %v3994_v62  ;;  %v3004_v26 = vpop.permute.xlu0 %764  ;;  %v3202_v25 = vld [vmem:[%s3969_s0 + $0x78] sm:$0xff] }
 0x1e3   :  { %1271 = vperm.xlu0 %2153, %v2439_v21   ;;  %955 = vperm.xlu1 %2119, %v2434_v20  }
 0x1e4   :  { %2121 = vset.pattern.permute.xlu2 %v4080_v34 }
 0x1e5   :  { %1045 = vperm.xlu2 %2121, %v2325_v2  }
 0x1e9   :  { %v3016_v29 = vpop.permute.xlu1 %740  ;;  %v788_v15 = vpop.permute.xlu2 %787 }
 0x1ea   :  { %v847_v31 = vsel %vm767_vm8, %v788_v15, 0.0  ;;  %v792_v4 = vpop.permute.xlu0 %791 }
 0x1eb   :  { %v3019_v18 = vadd.f32 %v847_v31, %v703_v56  ;;  %v848_v49 = vsel %vm768_vm9, %v792_v4, 0.0  ;;  %1211 = vperm.xlu0 %2153, %v2320_v1   ;;  %2122 = vset.pattern.permute.xlu1 %v4080_v34  ;;  %v4098_v56 = vld [vmem:[#allocation26_spill] sm:$0xff]  ;;  %v4099_v31 = vld [vmem:[#allocation69_spill] sm:$0xff]  ;;  %vm766_vm9 = vcmp.eq.s32.totalorder %v2952_v40, %v2849_v13 }
 0x1ec   :  { %v3024_v14 = vadd.f32 %v848_v49, %v2873_v27  ;;  %1111 = vperm.xlu1 %2122, %v2439_v21   ;;  %v4100_v49 = vld [vmem:[#allocation5_spill] sm:$0xff] }
 0x1ed   :  { %1115 = vperm.xlu2 %2121, %v2434_v20  }
 0x1f1   :  { %v3028_v51 = vpop.permute.xlu1 %749  ;;  %v3030_v43 = vpop.permute.xlu2 %799 }
 0x1f2   :  { %v804_v36 = vpop.permute.xlu0 %803 }
 0x1f3   :  { %v851_v6 = vsel %vm771_vm10, %v804_v36, 0.0  ;;  %1291 = vperm.xlu0 %2153, %v2447_v22  }
 0x1f4   :  { %v3035_v16 = vadd.f32 %v851_v6, %v2893_v60  ;;  %2123 = vset.pattern.permute.xlu1 %v3994_v62  ;;  %v692_v6 = vsel %vm612_vm14, %v2945_v57, 0.0  ;;  %v4102_v57 = vld [vmem:[#allocation17_spill] sm:$0xff] }
 0x1f5   :  { %2124 = vset.pattern.permute.xlu2 %v3994_v62  ;;  %1205 = vperm.xlu1 %2123, %v2325_v2   ;;  %v4090_v2 = vld [vmem:[#allocation4_spill] sm:$0xff]  ;;  %vm119_vm1 = vcmp.eq.s32.totalorder %v4102_v57, %v2849_v13  ;;  %v2061_v57 = vld [vmem:[%s3971_s2 + $0x20] sm:$0xff] }
 0x1f6   :  { %1208 = vperm.xlu2 %2124, %v2344_v5  }
 0x1f9   :  { %v3041_v21 = vpop.permute.xlu1 %758  ;;  %v3043_v27 = vpop.permute.xlu2 %811 }
 0x1fa   :  { %4088 = vst [vmem:[#allocation53_spill] sm:$0xff] %v3041_v21  ;;  %v4118_v21 = vld [vmem:[#allocation65_spill] sm:$0xff] }
 0x1fb   :  { %1226 = vperm.xlu0 %2153, %v2385_v12   ;;  %v3046_v23 = vpop.permute.xlu0 %1107  ;;  %v4092_v12 = vld [vmem:[#allocation33_spill] sm:$0xff] }
 0x1fc   :  { %vm292_vm11 = vcmp.eq.s32.totalorder %v4092_v12, %v2849_v13  ;;  %v4101_v12 = vld [vmem:[#allocation36_spill] sm:$0xff] }
 0x1fd   :  { %1275 = vperm.xlu1 %2123, %v2434_v20   ;;  %v4093_v20 = vld [vmem:[#allocation14_spill] sm:$0xff]  ;;  %v372_v63 = vsel %vm292_vm11, %v4095_v0, 0.0  ;;  %vm295_vm15 = vcmp.eq.s32.totalorder %v4101_v12, %v2849_v13  ;;  %v4103_v0 = vld [vmem:[#allocation56_spill] sm:$0xff]  ;;  %v4107_v12 = vld [vmem:[#allocation71_spill] sm:$0xff] }
 0x1fe   :  { %2125 = vset.pattern.permute.xlu2 %v3991_v38  ;;  %vm116_vm12 = vcmp.eq.s32.totalorder %v4093_v20, %v2849_v13  ;;  %vm455_vm2 = vcmp.eq.s32.totalorder %v4103_v0, %v2849_v13  ;;  %v375_v53 = vsel %vm295_vm15, %v4104_v7, 0.0 }
 0x1ff   :  { %891 = vperm.xlu2 %2125, %v2320_v1   ;;  %v4094_v1 = vld [vmem:[#allocation54_spill] sm:$0xff]  ;;  %v212_v15 = vsel %vm116_vm12, %v4098_v56, 0.0 }
 0x200   :  { %vm452_vm13 = vcmp.eq.s32.totalorder %v4094_v1, %v2849_v13  ;;  %v388_v36 = vadd.f32 %v372_v63, %v212_v15  ;;  %v2239_v1 = vld [vmem:[%s3969_s0 + $0x20] sm:$0xff]  ;;  %v2062_v15 = vld [vmem:[%s3971_s2 + $0x28] sm:$0xff] }
 0x201   :  { %v3051_v22 = vpop.permute.xlu1 %783  ;;  %v3053_v60 = vpop.permute.xlu2 %823  ;;  %v532_v4 = vsel %vm452_vm13, %v4099_v31, 0.0  ;;  %v4105_v31 = vld [vmem:[#allocation76_spill] sm:$0xff] }
 0x202   :  { %4089 = vst [vmem:[#allocation35_spill] sm:$0xff] %v3053_v60  ;;  %v548_v20 = vadd.f32 %v532_v4, %v388_v36  ;;  %vm615_vm3 = vcmp.eq.s32.totalorder %v4105_v31, %v2849_v13  ;;  %v4106_v36 = vld [vmem:[#allocation28_spill] sm:$0xff] }
 0x203   :  { %1235 = vperm.xlu0 %2153, %v4090_v2   ;;  %v3056_v5 = vpop.permute.xlu0 %1048  ;;  %v2063_v2 = vld [vmem:[%s3971_s2 + $0x30] sm:$0xff] }
 0x204   :  { %1431 = vmatpush.bf16.msra.mxu0 %v2063_v2  ;;  %v708_v63 = vadd.f32 %v692_v6, %v548_v20  ;;  %2074 = vmatpush.bf16.msra.mxu3 %v2063_v2  ;;  %v215_v6 = vsel %vm119_vm1, %v4106_v36, 0.0  ;;  %v535_v2 = vsel %vm455_vm2, %v4107_v12, 0.0  ;;  %v2058_v36 = vld [vmem:[%s3971_s2 + $0x8] sm:$0xff] }
 0x205   :  { %2126 = vset.pattern.permute.xlu1 %v3991_v38  ;;  %v391_v20 = vadd.f32 %v375_v53, %v215_v6  ;;  %v4110_v6 = vld [vmem:[#allocation7_spill] sm:$0xff] }
 0x206   :  { %894 = vperm.xlu1 %2126, %v4091_v28  }
 0x207   :  { %959 = vperm.xlu2 %2125, %v2429_v19   ;;  %v551_v0 = vadd.f32 %v535_v2, %v391_v20  ;;  %v2057_v20 = vld [vmem:[%s3971_s2] sm:$0xff] }
 0x208   :  { %1432 = vmatpush.bf16.msra.mxu0 %v2062_v15  ;;  %2075 = vmatpush.bf16.msra.mxu3 %v2062_v15  ;;  %v3145_v15 = vld [vmem:[%s3970_s1 + $0x20] sm:$0xff] }
 0x209   :  { %v3067_v48 = vpop.permute.xlu1 %795 }
 0x20a   :  { %v3070_v33 = vpop.permute.xlu2 %882 }
 0x20b   :  { %2156 = vset.pattern.permute.xlu0 %v4097_v41  ;;  %v3078_v42 = vpop.permute.xlu0 %1127  ;;  %vm927_vm11 = vcmp.eq.s32.totalorder %v3070_v33, %v2849_v13 }
 0x20c   :  { %815 = vperm.xlu0 %2156, %v4100_v49   ;;  %1433 = vmatpush.bf16.msra.mxu0 %v2061_v57 }
 0x20d   :  { %2076 = vmatpush.bf16.msra.mxu3 %v2061_v57  ;;  %v2243_v57 = vld [vmem:[%s3969_s0 + $0x30] sm:$0xff] }
 0x20e   :  { %2127 = vset.pattern.permute.xlu1 %v4080_v34 }
 0x20f   :  { %2128 = vset.pattern.permute.xlu2 %v4080_v34  ;;  %1051 = vperm.xlu1 %2127, %v2239_v1   ;;  %v695_v1 = vsel %vm615_vm3, %v2957_v59, 0.0  ;;  %v2060_v59 = vld [vmem:[%s3971_s2 + $0x18] sm:$0xff] }
 0x210   :  { %1054 = vperm.xlu2 %2128, %v4091_v28   ;;  %1434 = vmatpush.bf16.msra.mxu0 %v2060_v59 }
 0x211   :  { %v808_v44 = vpop.permute.xlu1 %807  ;;  %2077 = vmatpush.bf16.msra.mxu3 %v2060_v59  ;;  %v3180_v59 = vld [vmem:[%s3970_s1 + $0x30] sm:$0xff] }
 0x212   :  { %v852_v56 = vsel %vm772_vm0, %v808_v44, 0.0  ;;  %4112 = vst [vmem:[#allocation4_spill] sm:$0xff] %v3180_v59 }
 0x213   :  { %v3107_v28 = vadd.f32 %v852_v56, %v708_v63  ;;  %v3109_v4 = vpop.permute.xlu0 %1063  ;;  %v3111_v49 = vpop.permute.xlu2 %1039  ;;  %v711_v63 = vadd.f32 %v695_v1, %v551_v0  ;;  %v3160_v1 = vld [vmem:[%s3970_s1 + $0x28] sm:$0xff] }
 0x214   :  { %827 = vperm.xlu0 %2156, %v2493_v30   ;;  %4111 = vst [vmem:[#allocation58_spill] sm:$0xff] %v3160_v1  ;;  %vm1086_vm13 = vcmp.eq.s32.totalorder %v3111_v49, %v2849_v13 }
 0x217   :  { %1119 = vperm.xlu1 %2127, %v2429_v19   ;;  %v2059_v19 = vld [vmem:[%s3971_s2 + $0x10] sm:$0xff] }
 0x218   :  { %1123 = vperm.xlu2 %2128, %v2457_v24   ;;  %v2240_v24 = vld [vmem:[%s3969_s0 + $0x28] sm:$0xff]  ;;  %1435 = vmatpush.bf16.msra.mxu0 %v2059_v19 }
 0x219   :  { %v820_v30 = vpop.permute.xlu1 %819  ;;  %2078 = vmatpush.bf16.msra.mxu3 %v2059_v19 }
 0x21a   :  { %v855_v44 = vsel %vm775_vm4, %v820_v30, 0.0  ;;  %v3173_v30 = vld [vmem:[%s3969_s0 + $0x70] sm:$0xff]  ;;  %vm769_vm4 = vcmp.eq.s32.totalorder %v2962_v39, %v2849_v13  ;;  %v2250_v39 = vld [vmem:[%s3969_s0 + $0x48] sm:$0xff] }
 0x21b   :  { %v3127_v7 = vadd.f32 %v855_v44, %v711_v63  ;;  %v3129_v53 = vpop.permute.xlu0 %1147  ;;  %v3131_v56 = vpop.permute.xlu2 %1103 }
 0x21c   :  { %4108 = vst [vmem:[#allocation12_spill] sm:$0xff] %v3129_v53  ;;  %831 = vperm.xlu0 %2156, %v4109_v50   ;;  %1436 = vmatpush.bf16.msra.mxu0 %v2058_v36  ;;  %v3186_v50 = vld [vmem:[%s3970_s1 + $0x38] sm:$0xff] }
 0x21d   :  { %2079 = vmatpush.bf16.msra.mxu3 %v2058_v36  ;;  %v4114_v36 = vld [vmem:[#allocation27_spill] sm:$0xff] }
 0x21e   :  { %vm286_vm6 = vcmp.eq.s32.totalorder %v4114_v36, %v2849_v13  ;;  %v526_v36 = vsel %vm446_vm7, %v4118_v21, 0.0  ;;  %v846_v21 = vsel %vm766_vm9, %v3051_v22, 0.0  ;;  %v4120_v22 = vmov 0  }
 0x21f   :  { %2129 = vset.pattern.permute.xlu1 %v3994_v62  ;;  %vm1479_vm7 = vcmask 64512  }
 0x220   :  { %2130 = vset.pattern.permute.xlu2 %v3994_v62  ;;  %1214 = vperm.xlu1 %2129, %v2240_v24   ;;  %v4113_v24 = vld [vmem:[#allocation9_spill] sm:$0xff] }
 0x221   :  { %1279 = vperm.xlu2 %2130, %v3145_v15   ;;  %1437 = vmatpush.bf16.msra.mxu0 %v2057_v20  ;;  %vm110_vm5 = vcmp.eq.s32.totalorder %v4113_v24, %v2849_v13  ;;  %v4117_v24 = vld [vmem:[#allocation22_spill] sm:$0xff] }
 0x222   :  { %v880_v31 = vpop.permute.xlu1 %879  ;;  %2080 = vmatpush.bf16.msra.mxu3 %v2057_v20  ;;  %v4115_v20 = vld [vmem:[#allocation43_spill] sm:$0xff] }
 0x223   :  { %vm926_vm10 = vcmp.eq.s32.totalorder %v880_v31, %v2849_v13 }
 0x224   :  { %843 = vperm.xlu0 %2156, %v4110_v6   ;;  %v944_v12 = vpop.permute.xlu0 %943 }
 0x225   :  { %v3152_v2 = vpop.permute.xlu2 %1202  ;;  %v1006_v40 = vsel %vm926_vm10, %v944_v12, 0.0 }
 0x226   :  { %vm1247_vm14 = vcmp.eq.s32.totalorder %v3152_v2, %v2849_v13 }
 0x228   :  { %1283 = vperm.xlu1 %2129, %v3160_v1   ;;  %v206_v1 = vsel %vm110_vm5, %v4117_v24, 0.0  ;;  %vm1089_vm5 = vcmp.eq.s32.totalorder %v3056_v5, %v2849_v13 }
 0x229   :  { %2131 = vset.pattern.permute.xlu2 %v3991_v38 }
 0x22a   :  { %897 = vperm.xlu2 %2131, %v2243_v57   ;;  %v948_v0 = vpop.permute.xlu1 %947 }
 0x22b   :  { %v1007_v31 = vsel %vm927_vm11, %v948_v0, 0.0 }
 0x22c   :  { %2162 = vset.pattern.permute.xlu0 %v4080_v34  ;;  %v3168_v63 = vpop.permute.xlu0 %885  ;;  %v1023_v33 = vadd.f32 %v1007_v31, %v3019_v18 }
 0x22d   :  { %1081 = vperm.xlu0 %2162, %v3173_v30   ;;  %v1268_v44 = vpop.permute.xlu2 %1267 }
 0x22e   :  { %v1327_v0 = vsel %vm1247_vm14, %v1268_v44, 0.0  ;;  %v4124_v44 = vld [vmem:[#allocation45_spill] sm:$0xff] }
 0x230   :  { %2132 = vset.pattern.permute.xlu1 %v3991_v38  ;;  %v366_v38 = vsel %vm286_vm6, %v4115_v20, 0.0  ;;  %v4119_v20 = vld [vmem:[#allocation70_spill] sm:$0xff] }
 0x231   :  { %967 = vperm.xlu1 %2132, %v3180_v59   ;;  %v382_v58 = vadd.f32 %v366_v38, %v206_v1  ;;  %vm606_vm8 = vcmp.eq.s32.totalorder %v4119_v20, %v2849_v13  ;;  %v2248_v38 = vld [vmem:[%s3969_s0 + $0x38] sm:$0xff] }
 0x232   :  { %971 = vperm.xlu2 %2131, %v3186_v50  }
 0x233   :  { %v1043_v19 = vpop.permute.xlu1 %1042  ;;  %v542_v52 = vadd.f32 %v526_v36, %v382_v58 }
 0x234   :  { %v3193_v6 = vpop.permute.xlu0 %963  ;;  %vm1087_vm12 = vcmp.eq.s32.totalorder %v1043_v19, %v2849_v13  ;;  %v1166_v19 = vsel %vm1086_vm13, %v3131_v56, 0.0  ;;  %v4123_v56 = vld [vmem:[#allocation29_spill] sm:$0xff] }
 0x235   :  { %2166 = vset.pattern.permute.xlu0 %v3994_v62  ;;  %v686_v62 = vsel %vm606_vm8, %v2904_v47, 0.0  ;;  %v1167_v36 = vsel %vm1087_vm12, %v3046_v23, 0.0  ;;  %vm289_vm0 = vcmp.eq.s32.totalorder %v4123_v56, %v2849_v13  ;;  %v4131_v56 = vmov 5  }
 0x236   :  { %1244 = vperm.xlu0 %2166, %v3202_v25   ;;  %v3207_v37 = vpop.permute.xlu2 %951  ;;  %v702_v1 = vadd.f32 %v686_v62, %v542_v52  ;;  %v1183_v12 = vadd.f32 %v1167_v36, %v1023_v33  ;;  %v4121_v52 = vmov 7   ;;  %v369_v31 = vsel %vm289_vm0, %v4124_v44, 0.0  ;;  %v4127_v36 = vld [vmem:[#allocation50_spill] sm:$0xff]  ;;  %v4128_v33 = vld [vmem:[#allocation25_spill] sm:$0xff] }
 0x237   :  { %vm449_vm2 = vcmp.eq.s32.totalorder %v4127_v36, %v2849_v13  ;;  %v2249_v44 = vld [vmem:[%s3969_s0 + $0x40] sm:$0xff]  ;;  %vm928_vm8 = vcmp.eq.s32.totalorder %v3168_v63, %v2849_v13 }
 0x238   :  { %v862_v24 = vadd.f32 %v846_v21, %v702_v1  ;;  %v1343_v2 = vadd.f32 %v1327_v0, %v1183_v12  ;;  %v4129_v12 = vld [vmem:[#allocation67_spill] sm:$0xff] }
 0x239   :  { %2133 = vset.pattern.permute.xlu1 %v4080_v34  ;;  %v529_v0 = vsel %vm449_vm2, %v4129_v12, 0.0  ;;  %v3276_v12 = vld [vmem:[%s3970_s1 + $0x40] sm:$0xff] }
 0x23a   :  { %2134 = vset.pattern.permute.xlu2 %v4080_v34  ;;  %1057 = vperm.xlu1 %2133, %v2243_v57   ;;  %v1022_v62 = vadd.f32 %v1006_v40, %v862_v24  ;;  %4132 = vst [vmem:[#allocation14_spill] sm:$0xff] %v3276_v12 }
 0x23b   :  { %1060 = vperm.xlu2 %2134, %v2248_v38  }
 0x23c   :  { %v1200_v58 = vpop.permute.xlu1 %1199  ;;  %v3224_v47 = vpop.permute.xlu0 %900  ;;  %v1182_v49 = vadd.f32 %v1166_v19, %v1022_v62 }
 0x23d   :  { %vm1246_vm15 = vcmp.eq.s32.totalorder %v1200_v58, %v2849_v13  ;;  %v4126_v58 = vld [vmem:[#allocation10_spill] sm:$0xff] }
 0x23e   :  { %2169 = vset.pattern.permute.xlu0 %v4120_v22  ;;  %vm113_vm1 = vcmp.eq.s32.totalorder %v4126_v58, %v2849_v13 }
 0x23f   :  { %v3230_v20 = vpop.permute.xlu2 %1045  ;;  %v209_v19 = vsel %vm113_vm1, %v4128_v33, 0.0 }
 0x240   :  { %vm1088_vm9 = vcmp.eq.s32.totalorder %v3230_v20, %v2849_v13  ;;  %v3322_v20 = vld [vmem:[%s3970_s1 + $0x78] sm:$0xff] }
 0x242   :  { %1131 = vperm.xlu1 %2133, %v3186_v50  }
 0x243   :  { %2135 = vset.pattern.permute.xlu2 %v4121_v52 }
 0x244   :  { %1217 = vperm.xlu2 %2135, %v2243_v57   ;;  %v1264_v23 = vpop.permute.xlu1 %1263  ;;  %v3239_v21 = vpop.permute.xlu0 %983 }
 0x245   :  { %4122 = vst [vmem:[#allocation3_spill] sm:$0xff] %v3239_v21  ;;  %v1326_v1 = vsel %vm1246_vm15, %v1264_v23, 0.0  ;;  %v385_v23 = vadd.f32 %v369_v31, %v209_v19 }
 0x246   :  { %v1342_v40 = vadd.f32 %v1326_v1, %v1182_v49 }
 0x247   :  { %v1116_v24 = vpop.permute.xlu2 %1115 }
 0x248   :  { %v1358_v18 = vpack.c.bf16 %v1343_v2, %v1342_v40  ;;  %v545_v40 = vadd.f32 %v529_v0, %v385_v23  ;;  %v849_v2 = vsel %vm769_vm4, %v3067_v48, 0.0  ;;  %v1169_v5 = vsel %vm1089_vm5, %v1116_v24, 0.0  ;;  %v3290_v0 = vld [vmem:[%s3970_s1 + $0x50] sm:$0xff] }
 0x249   :  { %v1510_v23 = vsel %vm1479_vm7, %v3290_v0, 0.0 }
 0x24a   :  { %2136 = vset.pattern.permute.xlu1 %v4121_v52  ;;  %1438 = vmatmul.bf16.vlgmr.msra.gmra.mxu0 %v1358_v18 }
 0x24b   :  { %1220 = vperm.xlu1 %2136, %v2248_v38   ;;  %v4130_v38 = vld [vmem:[#allocation72_spill] sm:$0xff] }
 0x24c   :  { %1287 = vperm.xlu2 %2135, %v3180_v59   ;;  %v3246_v57 = vpop.permute.xlu0 %995  ;;  %vm609_vm3 = vcmp.eq.s32.totalorder %v4130_v38, %v2849_v13 }
 0x24d   :  { %4125 = vst [vmem:[#allocation33_spill] sm:$0xff] %v3246_v57  ;;  %v889_v62 = vpop.permute.xlu1 %888  ;;  %v689_v49 = vsel %vm609_vm3, %v2924_v46, 0.0  ;;  %v4142_v57 = vld [vmem:[#allocation20_spill] sm:$0xff] }
 0x24e   :  { %v705_v18 = vadd.f32 %v689_v49, %v545_v40  ;;  %vm929_vm6 = vcmp.eq.s32.totalorder %v889_v62, %v2849_v13  ;;  %v3282_v62 = vld [vmem:[%s3970_s1 + $0x48] sm:$0xff]  ;;  %vm122_vm1 = vcmp.eq.s32.totalorder %v4142_v57, %v2849_v13 }
 0x24f   :  { %4133 = vst [vmem:[#allocation54_spill] sm:$0xff] %v3282_v62  ;;  %v4147_v57 = vld [vmem:[#allocation8_spill] sm:$0xff] }
 0x250   :  { %v1209_v1 = vpop.permute.xlu2 %1208  ;;  %v865_v46 = vadd.f32 %v849_v2, %v705_v18  ;;  %v2254_v2 = vld [vmem:[%s3970_s1] sm:$0xff]  ;;  %vm114_vm4 = vcmp.eq.s32.totalorder %v4147_v57, %v2849_v13 }
 0x251   :  { %v1480_v18 = vsel %vm1479_vm7, %v2254_v2, 0.0  ;;  %vm1249_vm11 = vcmp.eq.s32.totalorder %v1209_v1, %v2849_v13 }
 0x253   :  { %2137 = vset.pattern.permute.xlu1 %v4131_v56 }
 0x254   :  { %2138 = vset.pattern.permute.xlu2 %v4131_v56  ;;  %903 = vperm.xlu1 %2137, %v2249_v44  }
 0x255   :  { %906 = vperm.xlu2 %2138, %v2250_v39   ;;  %v956_v48 = vpop.permute.xlu1 %955  ;;  %v1272_v31 = vpop.permute.xlu0 %1271 }
 0x256   :  { %v1009_v58 = vsel %vm929_vm6, %v956_v48, 0.0  ;;  %v1008_v48 = vsel %vm928_vm8, %v3207_v37, 0.0  ;;  %vm773_vm6 = vcmp.eq.s32.totalorder %v3016_v29, %v2849_v13  ;;  %v4153_v29 = vld [vmem:[#allocation15_spill] sm:$0xff] }
 0x257   :  { %v1025_v36 = vadd.f32 %v1009_v58, %v865_v46  ;;  %v1024_v58 = vadd.f32 %v1008_v48, %v3024_v14  ;;  %v1525_v14 = vsel %vm1479_vm7, %v3322_v20, 0.0  ;;  %v210_v55 = vsel %vm114_vm4, %v4153_v29, 0.0 }
 0x259   :  { %v3271_v33 = vpop.permute.xlu2 %891  ;;  %v1185_v19 = vadd.f32 %v1169_v5, %v1025_v36 }
 0x25c   :  { %975 = vperm.xlu1 %2137, %v3276_v12  }
 0x25d   :  { %979 = vperm.xlu2 %2138, %v3282_v62   ;;  %v3285_v24 = vpop.permute.xlu0 %1211 }
 0x25e   :  { %v1112_v38 = vpop.permute.xlu1 %1111 }
 0x260   :  { %1511 = vadd.xlane.f32.xlu0 %v1510_v23 }
 0x261   :  { %v3294_v49 = vpop.permute.xlu2 %959 }
 0x264   :  { %2139 = vset.pattern.permute.xlu1 %v4080_v34 }
 0x265   :  { %2140 = vset.pattern.permute.xlu2 %v4080_v34  ;;  %1066 = vperm.xlu1 %2139, %v2250_v39   ;;  %v3298_v40 = vpop.permute.xlu0 %1291  ;;  %v1168_v39 = vsel %vm1088_vm9, %v1112_v38, 0.0  ;;  %vm933_vm9 = vcmp.eq.s32.totalorder %v3224_v47, %v2849_v13  ;;  %v4158_v47 = vld [vmem:[#allocation62_spill] sm:$0xff] }
 0x266   :  { %1135 = vperm.xlu2 %2140, %v3276_v12   ;;  %v1184_v37 = vadd.f32 %v1168_v39, %v1024_v58 }
 0x267   :  { %v1206_v46 = vpop.permute.xlu1 %1205 }
 0x268   :  { %1481 = vadd.xlane.f32.xlu0 %v1480_v18  ;;  %vm1248_vm10 = vcmp.eq.s32.totalorder %v1206_v46, %v2849_v13 }
 0x269   :  { %v1328_v23 = vsel %vm1248_vm10, %v1272_v31, 0.0 }
 0x26a   :  { %v3308_v5 = vpop.permute.xlu2 %1054  ;;  %v1344_v2 = vadd.f32 %v1328_v23, %v1184_v37  ;;  %v4135_v37 = vld [vmem:[#allocation34_spill] sm:$0xff] }
 0x26b   :  { %vm293_vm13 = vcmp.eq.s32.totalorder %v4135_v37, %v2849_v13 }
 0x26d   :  { %1139 = vperm.xlu1 %2139, %v3282_v62   ;;  %v3315_v36 = vpop.permute.xlu0 %1226 }
 0x26e   :  { %2141 = vset.pattern.permute.xlu2 %v4121_v52 }
 0x26f   :  { %1223 = vperm.xlu2 %2141, %v2249_v44   ;;  %v1276_v63 = vpop.permute.xlu1 %1275  ;;  %v1492_v44 = vsel %vm1479_vm7, %v3145_v15, 0.0  ;;  %v3349_v15 = vld [vmem:[%s3969_s0 + $0x50] sm:$0xff] }
 0x270   :  { %v1329_v38 = vsel %vm1249_vm11, %v1276_v63, 0.0  ;;  %1526 = vadd.xlane.f32.xlu0 %v1525_v14  ;;  %v4136_v63 = vld [vmem:[#allocation41_spill] sm:$0xff] }
 0x271   :  { %v1345_v18 = vadd.f32 %v1329_v38, %v1185_v19  ;;  %v373_v14 = vsel %vm293_vm13, %v4136_v63, 0.0  ;;  %v4137_v38 = vld [vmem:[#allocation13_spill] sm:$0xff]  ;;  %v4143_v63 = vld [vmem:[#allocation59_spill] sm:$0xff]  ;;  %vm461_vm13 = vcmp.eq.s32.totalorder %v4158_v47, %v2849_v13 }
 0x272   :  { %v3326_v31 = vpop.permute.xlu2 %1123  ;;  %vm117_vm14 = vcmp.eq.s32.totalorder %v4137_v38, %v2849_v13  ;;  %vm458_vm2 = vcmp.eq.s32.totalorder %v4143_v63, %v2849_v13  ;;  %v4144_v38 = vld [vmem:[#allocation79_spill] sm:$0xff]  ;;  %v4151_v63 = vld [vmem:[#allocation73_spill] sm:$0xff] }
 0x273   :  { %v1359_v46 = vpack.c.bf16 %v1345_v18, %v1344_v2  ;;  %v4138_v2 = vld [vmem:[#allocation39_spill] sm:$0xff]  ;;  %v4139_v18 = vld [vmem:[#allocation57_spill] sm:$0xff]  ;;  %vm613_vm3 = vcmp.eq.s32.totalorder %v4144_v38, %v2849_v13  ;;  %v538_v38 = vsel %vm458_vm2, %v4151_v63, 0.0  ;;  %v4155_v63 = vld [vmem:[#allocation42_spill] sm:$0xff]  ;;  %vm930_vm2 = vcmp.eq.s32.totalorder %v3271_v33, %v2849_v13 }
 0x274   :  { %vm298_vm15 = vcmp.eq.s32.totalorder %v4138_v2, %v2849_v13  ;;  %vm453_vm0 = vcmp.eq.s32.totalorder %v4139_v18, %v2849_v13  ;;  %vm301_vm11 = vcmp.eq.s32.totalorder %v4155_v63, %v2849_v13 }
 0x275   :  { %2142 = vset.pattern.permute.xlu1 %v4121_v52  ;;  %1443 = vmatmul.bf16.gmra.mxu0 %v1359_v46  ;;  %v3329_v1 = vpop.permute.xlu0 %1235 }
 0x276   :  { %4134 = vst [vmem:[#allocation47_spill] sm:$0xff] %v3329_v1  ;;  %1295 = vperm.xlu1 %2142, %v3276_v12   ;;  %v4146_v1 = vld [vmem:[#allocation51_spill] sm:$0xff]  ;;  %v693_v12 = vsel %vm613_vm3, %v2886_v10, 0.0  ;;  %v4149_v10 = vld [vmem:[#allocation30_spill] sm:$0xff]  ;;  %vm1091_vm3 = vcmp.eq.s32.totalorder %v3308_v5, %v2849_v13 }
 0x277   :  { %1299 = vperm.xlu2 %2141, %v3282_v62   ;;  %v378_v18 = vsel %vm298_vm15, %v4146_v1, 0.0  ;;  %v218_v1 = vsel %vm122_vm1, %v4149_v10, 0.0  ;;  %v853_v62 = vsel %vm773_vm6, %v3043_v27, 0.0  ;;  %v4154_v10 = vld [vmem:[#allocation55_spill] sm:$0xff]  ;;  %v4156_v27 = vld [vmem:[#allocation61_spill] sm:$0xff]  ;;  %vm778_vm15 = vcmp.eq.s32.totalorder %v2986_v3, %v2849_v13 }
 0x278   :  { %v895_v48 = vpop.permute.xlu1 %894  ;;  %1493 = vadd.xlane.f32.xlu0 %v1492_v44  ;;  %v4140_v44 = vld [vmem:[#allocation18_spill] sm:$0xff]  ;;  %vm450_vm10 = vcmp.eq.s32.totalorder %v4154_v10, %v2849_v13  ;;  %vm770_vm1 = vcmp.eq.s32.totalorder %v2998_v17, %v2849_v13  ;;  %vm1250_vm6 = vcmp.eq.s32.totalorder %v3285_v24, %v2849_v13 }
 0x279   :  { %vm931_vm12 = vcmp.eq.s32.totalorder %v895_v48, %v2849_v13  ;;  %v213_v48 = vsel %vm117_vm14, %v4140_v44, 0.0  ;;  %v3386_v44 = vld [vmem:[%s3970_s1 + $0x58] sm:$0xff]  ;;  %v530_v21 = vsel %vm450_vm10, %v4156_v27, 0.0 }
 0x27a   :  { %v1011_v19 = vsel %vm931_vm12, %v3193_v6, 0.0  ;;  %v389_v37 = vadd.f32 %v373_v14, %v213_v48  ;;  %v4148_v48 = vld [vmem:[#allocation78_spill] sm:$0xff] }
 0x27b   :  { %v3338_v39 = vadd.f32 %v1011_v19, %v3035_v16  ;;  %v3340_v58 = vpop.permute.xlu2 %1279  ;;  %v3355_v16 = vld [vmem:[%s3969_s0 + $0x58] sm:$0xff]  ;;  %v4141_v19 = vld [vmem:[#allocation64_spill] sm:$0xff]  ;;  %vm618_vm5 = vcmp.eq.s32.totalorder %v4148_v48, %v2849_v13  ;;  %v394_v48 = vadd.f32 %v378_v18, %v218_v1 }
 0x27c   :  { %v533_v59 = vsel %vm453_vm0, %v4141_v19, 0.0  ;;  %v4150_v19 = vld [vmem:[#allocation32_spill] sm:$0xff]  ;;  %v4159_v1 = vld [vmem:[#allocation77_spill] sm:$0xff]  ;;  %v1330_v5 = vsel %vm1250_vm6, %v3340_v58, 0.0 }
 0x27d   :  { %v549_v14 = vadd.f32 %v533_v59, %v389_v37  ;;  %vm290_vm8 = vcmp.eq.s32.totalorder %v4150_v19, %v2849_v13  ;;  %v4152_v37 = vld [vmem:[#allocation38_spill] sm:$0xff]  ;;  %v698_v19 = vsel %vm618_vm5, %v2965_v35, 0.0  ;;  %vm610_vm14 = vcmp.eq.s32.totalorder %v4159_v1, %v2849_v13 }
 0x27e   :  { %v3342_v23 = vpop.permute.xlu0 %815  ;;  %2143 = vset.pattern.permute.xlu1 %v4131_v56  ;;  %v370_v57 = vsel %vm290_vm8, %v4152_v37, 0.0  ;;  %v690_v10 = vsel %vm610_vm14, %v2867_v54, 0.0  ;;  %vm781_vm5 = vcmp.eq.s32.totalorder %v3004_v26, %v2849_v13  ;;  %vm774_vm14 = vcmp.eq.s32.totalorder %v2976_v61, %v2849_v13 }
 0x27f   :  { %2144 = vset.pattern.permute.xlu2 %v4131_v56  ;;  %909 = vperm.xlu1 %2143, %v3349_v15   ;;  %v709_v53 = vadd.f32 %v693_v12, %v549_v14  ;;  %v4157_v12 = vld [vmem:[#allocation23_spill] sm:$0xff]  ;;  %v386_v18 = vadd.f32 %v370_v57, %v210_v55  ;;  %v4161_v57 = vld [vmem:[#allocation80_spill] sm:$0xff] }
 0x280   :  { %912 = vperm.xlu2 %2144, %v3355_v16   ;;  %vm125_vm12 = vcmp.eq.s32.totalorder %v4157_v12, %v2849_v13  ;;  %vm621_vm0 = vcmp.eq.s32.totalorder %v4161_v57, %v2849_v13  ;;  %v2262_v57 = vld [vmem:[%s3969_s0 + $0x68] sm:$0xff] }
 0x281   :  { %v3358_v6 = vpop.permute.xlu1 %1051  ;;  %v869_v60 = vadd.f32 %v853_v62, %v709_v53  ;;  %v4160_v53 = vld [vmem:[#allocation52_spill] sm:$0xff]  ;;  %v701_v27 = vsel %vm621_vm0, %v2974_v32, 0.0 }
 0x282   :  { %v381_v62 = vsel %vm301_vm11, %v4160_v53, 0.0  ;;  %vm1090_vm4 = vcmp.eq.s32.totalorder %v3358_v6, %v2849_v13 }
 0x284   :  { %v3369_v46 = vpop.permute.xlu2 %897 }
 0x286   :  { %v3379_v2 = vpop.permute.xlu0 %827 }
 0x287   :  { %4145 = vst [vmem:[#allocation75_spill] sm:$0xff] %v3379_v2  ;;  %987 = vperm.xlu1 %2143, %v3386_v44   ;;  %v554_v2 = vadd.f32 %v538_v38, %v394_v48  ;;  %v546_v48 = vadd.f32 %v530_v21, %v386_v18  ;;  %v4163_v21 = vld [vmem:[#allocation74_spill] sm:$0xff] }
 0x288   :  { %2145 = vset.pattern.permute.xlu2 %v4080_v34 }
 0x289   :  { %1069 = vperm.xlu2 %2145, %v3349_v15   ;;  %v1120_v59 = vpop.permute.xlu1 %1119  ;;  %v714_v35 = vadd.f32 %v698_v19, %v554_v2  ;;  %v541_v2 = vsel %vm461_vm13, %v4163_v21, 0.0  ;;  %v850_v19 = vsel %vm770_vm1, %v3030_v43, 0.0  ;;  %v706_v33 = vadd.f32 %v690_v10, %v546_v48 }
 0x28a   :  { %v1170_v12 = vsel %vm1090_vm4, %v1120_v59, 0.0 }
 0x28c   :  { %v972_v37 = vpop.permute.xlu2 %971 }
 0x28d   :  { %v1013_v14 = vsel %vm933_vm9, %v972_v37, 0.0  ;;  %v1010_v37 = vsel %vm930_vm2, %v3294_v49, 0.0  ;;  %v1171_v49 = vsel %vm1091_vm3, %v3326_v31, 0.0  ;;  %vm932_vm9 = vcmp.eq.s32.totalorder %v3369_v46, %v2849_v13 }
 0x28e   :  { %v3420_v29 = vadd.f32 %v1013_v14, %v869_v60  ;;  %v832_v38 = vpop.permute.xlu0 %831  ;;  %v4162_v60 = vld [vmem:[#allocation31_spill] sm:$0xff]  ;;  %v866_v14 = vadd.f32 %v850_v19, %v706_v33  ;;  %v1187_v24 = vadd.f32 %v1171_v49, %v3338_v39  ;;  %vm1255_vm3 = vcmp.eq.s32.totalorder %v3315_v36, %v2849_v13 }
 0x28f   :  { %v858_v55 = vsel %vm778_vm15, %v832_v38, 0.0  ;;  %2146 = vset.pattern.permute.xlu1 %v4080_v34  ;;  %v221_v54 = vsel %vm125_vm12, %v4162_v60, 0.0  ;;  %v3473_v39 = vld [vmem:[%s3970_s1 + $0x68] sm:$0xff]  ;;  %vm1094_vm15 = vcmp.eq.s32.totalorder %v3109_v4, %v2849_v13 }
 0x290   :  { %v3431_v3 = vadd.f32 %v858_v55, %v714_v35  ;;  %1072 = vperm.xlu1 %2146, %v3355_v16   ;;  %v397_v17 = vadd.f32 %v381_v62, %v221_v54  ;;  %v1026_v32 = vadd.f32 %v1010_v37, %v866_v14  ;;  %v3485_v55 = vld [vmem:[%s3970_s1 + $0x60] sm:$0xff] }
 0x291   :  { %1143 = vperm.xlu2 %2145, %v3290_v0  }
 0x292   :  { %v1215_v63 = vpop.permute.xlu1 %1214  ;;  %v557_v18 = vadd.f32 %v541_v2, %v397_v17  ;;  %v1186_v38 = vadd.f32 %v1170_v12, %v1026_v32 }
 0x293   :  { %vm1251_vm8 = vcmp.eq.s32.totalorder %v1215_v63, %v2849_v13 }
 0x294   :  { %v717_v43 = vadd.f32 %v701_v27, %v557_v18  ;;  %v1346_v59 = vadd.f32 %v1330_v5, %v1186_v38 }
 0x295   :  { %v1061_v47 = vpop.permute.xlu2 %1060 }
 0x296   :  { %v844_v1 = vpop.permute.xlu0 %843  ;;  %vm1093_vm11 = vcmp.eq.s32.totalorder %v1061_v47, %v2849_v13 }
 0x297   :  { %v861_v35 = vsel %vm781_vm5, %v844_v1, 0.0 }
 0x298   :  { %v3455_v53 = vadd.f32 %v861_v35, %v717_v43  ;;  %2148 = vset.pattern.permute.xlu1 %v4121_v52  ;;  %v3520_v35 = vld [vmem:[%s3970_s1 + $0x70] sm:$0xff] }
 0x299   :  { %2149 = vset.pattern.permute.xlu2 %v4121_v52  ;;  %1229 = vperm.xlu1 %2148, %v3349_v15   ;;  %v1501_v15 = vsel %vm1479_vm7, %v3186_v50, 0.0 }
 0x29a   :  { %1232 = vperm.xlu2 %2149, %v3355_v16   ;;  %v1284_v26 = vpop.permute.xlu1 %1283  ;;  %1502 = vadd.xlane.f32.xlu0 %v1501_v15 }
 0x29b   :  { %v1331_v31 = vsel %vm1251_vm8, %v1284_v26, 0.0 }
 0x29c   :  { %v1347_v6 = vadd.f32 %v1331_v31, %v1187_v24 }
 0x29e   :  { %v1218_v62 = vpop.permute.xlu2 %1217  ;;  %v1360_v48 = vpack.c.bf16 %v1347_v6, %v1346_v59 }
 0x29f   :  { %vm1252_vm12 = vcmp.eq.s32.totalorder %v1218_v62, %v2849_v13 }
 0x2a0   :  { %1448 = vmatmul.bf16.gmra.mxu0 %v1360_v48 }
 0x2a1   :  { %1303 = vperm.xlu1 %2148, %v3290_v0   ;;  %v2260_v0 = vld [vmem:[%s3969_s0 + $0x60] sm:$0xff] }
 0x2a2   :  { %1307 = vperm.xlu2 %2149, %v3386_v44  }
 0x2a3   :  { %v968_v58 = vpop.permute.xlu1 %967 }
 0x2a4   :  { %v1012_v54 = vsel %vm932_vm9, %v968_v58, 0.0  ;;  %vm616_vm9 = vcmp.eq.s32.totalorder %v2865_v9, %v2849_v13 }
 0x2a5   :  { %v1028_v19 = vadd.f32 %v1012_v54, %v3107_v28 }
 0x2a6   :  { %v1288_v10 = vpop.permute.xlu2 %1287 }
 0x2a7   :  { %v1332_v46 = vsel %vm1252_vm12, %v1288_v10, 0.0 }
 0x2a9   :  { %2150 = vset.pattern.permute.xlu1 %v4097_v41 }
 0x2aa   :  { %2151 = vset.pattern.permute.xlu2 %v4131_v56  ;;  %835 = vperm.xlu1 %2150, %v3473_v39  }
 0x2ab   :  { %915 = vperm.xlu2 %2151, %v2260_v0  }
 0x2ac   :  { %v1058_v16 = vpop.permute.xlu1 %1057 }
 0x2ad   :  { %vm1092_vm10 = vcmp.eq.s32.totalorder %v1058_v16, %v2849_v13 }
 0x2ae   :  { %v1172_v2 = vsel %vm1092_vm10, %v3078_v42, 0.0  ;;  %vm776_vm10 = vcmp.eq.s32.totalorder %v3028_v51, %v2849_v13  ;;  %v4173_v51 = vld [vmem:[#allocation83_spill] sm:$0xff] }
 0x2af   :  { %v3479_v50 = vpop.permute.xlu2 %906  ;;  %v1188_v33 = vadd.f32 %v1172_v2, %v1028_v19 }
 0x2b0   :  { %vm935_vm1 = vcmp.eq.s32.totalorder %v3479_v50, %v2849_v13 }
 0x2b1   :  { %v1348_v18 = vadd.f32 %v1332_v46, %v1188_v33  ;;  %v4171_v46 = vld [vmem:[#allocation75_spill] sm:$0xff] }
 0x2b2   :  { %2152 = vset.pattern.permute.xlu1 %v4131_v56 }
 0x2b3   :  { %991 = vperm.xlu2 %2151, %v3485_v55   ;;  %918 = vperm.xlu1 %2152, %v2262_v57  }
 0x2b4   :  { %v1132_v60 = vpop.permute.xlu1 %1131 }
 0x2b5   :  { %v1173_v17 = vsel %vm1093_vm11, %v1132_v60, 0.0  ;;  %v4168_v60 = vld [vmem:[#allocation21_spill] sm:$0xff]  ;;  %vm777_vm11 = vcmp.eq.s32.totalorder %v2983_v8, %v2849_v13  ;;  %v4174_v8 = vld [vmem:[#allocation12_spill] sm:$0xff] }
 0x2b6   :  { %v1189_v27 = vadd.f32 %v1173_v17, %v3420_v29  ;;  %v854_v29 = vsel %vm774_vm14, %v3342_v23, 0.0  ;;  %v4170_v17 = vld [vmem:[#allocation35_spill] sm:$0xff] }
 0x2b7   :  { %v980_v21 = vpop.permute.xlu2 %979  ;;  %v856_v33 = vsel %vm776_vm10, %v4170_v17, 0.0  ;;  %v4185_v17 = vld [vmem:[#allocation82_spill] sm:$0xff] }
 0x2b8   :  { %v1015_v38 = vsel %vm935_vm1, %v980_v21, 0.0 }
 0x2b9   :  { %v1031_v26 = vadd.f32 %v1015_v38, %v3127_v7 }
 0x2bb   :  { %2155 = vset.pattern.permute.xlu2 %v4080_v34  ;;  %2154 = vset.pattern.permute.xlu1 %v4080_v34 }
 0x2bc   :  { %1078 = vperm.xlu2 %2155, %v2262_v57   ;;  %1075 = vperm.xlu1 %2154, %v2260_v0   ;;  %v4165_v0 = vld [vmem:[#allocation44_spill] sm:$0xff] }
 0x2bd   :  { %v1221_v63 = vpop.permute.xlu1 %1220 }
 0x2be   :  { %vm1253_vm13 = vcmp.eq.s32.totalorder %v1221_v63, %v2849_v13  ;;  %v857_v63 = vsel %vm777_vm11, %v4171_v46, 0.0 }
 0x2bf   :  { %v1333_v42 = vsel %vm1253_vm13, %v3298_v40, 0.0  ;;  %v870_v40 = vadd.f32 %v854_v29, %v2913_v45 }
 0x2c0   :  { %v1349_v37 = vadd.f32 %v1333_v42, %v1189_v27  ;;  %v1136_v14 = vpop.permute.xlu2 %1135 }
 0x2c1   :  { %v1174_v61 = vsel %vm1094_vm15, %v1136_v14, 0.0 }
 0x2c2   :  { %v1361_v28 = vpack.c.bf16 %v1349_v37, %v1348_v18  ;;  %v873_v18 = vadd.f32 %v857_v63, %v4173_v51  ;;  %v4186_v63 = vld [vmem:[#allocation53_spill] sm:$0xff] }
 0x2c3   :  { %vm779_vm10 = vcmp.eq.s32.totalorder %v4186_v63, %v2849_v13  ;;  %v2067_v63 = vld [vmem:[%s3972_s3 + $0x10] sm:$0xff] }
 0x2c4   :  { %1155 = vperm.xlu2 %2155, %v3473_v39   ;;  %1151 = vperm.xlu1 %2154, %v3485_v55  }
 0x2c5   :  { %1453 = vmatmul.bf16.gmra.mxu0 %v1361_v28 }
 0x2c6   :  { %v904_v12 = vpop.permute.xlu1 %903 }
 0x2c7   :  { %vm934_vm0 = vcmp.eq.s32.totalorder %v904_v12, %v2849_v13 }
 0x2c9   :  { %v1224_v47 = vpop.permute.xlu2 %1223 }
 0x2ca   :  { %vm1254_vm4 = vcmp.eq.s32.totalorder %v1224_v47, %v2849_v13 }
 0x2cc   :  { %2158 = vset.pattern.permute.xlu2 %v4121_v52  ;;  %2157 = vset.pattern.permute.xlu1 %v4121_v52 }
 0x2cd   :  { %1311 = vperm.xlu2 %2158, %v3485_v55   ;;  %1238 = vperm.xlu1 %2157, %v2262_v57   ;;  %v4166_v57 = vld [vmem:[#allocation16_spill] sm:$0xff] }
 0x2ce   :  { %v976_v43 = vpop.permute.xlu1 %975  ;;  %vm120_vm6 = vcmp.eq.s32.totalorder %v4166_v57, %v2849_v13  ;;  %v4180_v57 = vld [vmem:[#allocation19_spill] sm:$0xff] }
 0x2cf   :  { %v1014_v32 = vsel %vm934_vm0, %v976_v43, 0.0  ;;  %v216_v54 = vsel %vm120_vm6, %v4168_v60, 0.0  ;;  %vm123_vm6 = vcmp.eq.s32.totalorder %v4180_v57, %v2849_v13 }
 0x2d0   :  { %v1030_v1 = vadd.f32 %v1014_v32, %v870_v40 }
 0x2d1   :  { %v1300_v49 = vpop.permute.xlu2 %1299 }
 0x2d2   :  { %v1190_v23 = vadd.f32 %v1174_v61, %v1030_v1  ;;  %v1335_v6 = vsel %vm1255_vm3, %v1300_v49, 0.0 }
 0x2d5   :  { %2159 = vset.pattern.permute.xlu2 %v4097_v41  ;;  %1315 = vperm.xlu1 %2157, %v3473_v39  }
 0x2d6   :  { %839 = vperm.xlu2 %2159, %v3520_v35  }
 0x2d7   :  { %v1067_v45 = vpop.permute.xlu1 %1066 }
 0x2d8   :  { %vm1095_vm2 = vcmp.eq.s32.totalorder %v1067_v45, %v2849_v13 }
 0x2da   :  { %v913_v4 = vpop.permute.xlu2 %912 }
 0x2db   :  { %vm937_vm13 = vcmp.eq.s32.totalorder %v913_v4, %v2849_v13 }
 0x2dd   :  { %2160 = vset.pattern.permute.xlu1 %v4131_v56 }
 0x2de   :  { %2161 = vset.pattern.permute.xlu2 %v4131_v56  ;;  %921 = vperm.xlu1 %2160, %v3173_v30  }
 0x2df   :  { %924 = vperm.xlu2 %2161, %v3202_v25   ;;  %v1140_v41 = vpop.permute.xlu1 %1139 }
 0x2e0   :  { %v1175_v5 = vsel %vm1095_vm2, %v1140_v41, 0.0 }
 0x2e1   :  { %v1191_v24 = vadd.f32 %v1175_v5, %v1031_v26  ;;  %v4175_v26 = vld [vmem:[#allocation54_spill] sm:$0xff] }
 0x2e3   :  { %v1070_v31 = vpop.permute.xlu2 %1069  ;;  %v1351_v48 = vadd.f32 %v1335_v6, %v1191_v24  ;;  %v1507_v24 = vsel %vm1479_vm7, %v4175_v26, 0.0  ;;  %v2072_v26 = vld [vmem:[%s3972_s3 + $0x38] sm:$0xff] }
 0x2e4   :  { %vm1096_vm15 = vcmp.eq.s32.totalorder %v1070_v31, %v2849_v13  ;;  %v4176_v31 = vld [vmem:[#allocation14_spill] sm:$0xff]  ;;  %2081 = vmatpush.bf16.msra.mxu2 %v2072_v26  ;;  %1876 = vmatpush.bf16.msra.mxu1 %v2072_v26 }
 0x2e5   :  { %v1504_v6 = vsel %vm1479_vm7, %v4176_v31, 0.0  ;;  %v2071_v31 = vld [vmem:[%s3972_s3 + $0x30] sm:$0xff] }
 0x2e6   :  { %999 = vperm.xlu1 %2160, %v3520_v35  }
 0x2e7   :  { %1003 = vperm.xlu2 %2161, %v3322_v20  }
 0x2e8   :  { %v1296_v56 = vpop.permute.xlu1 %1295  ;;  %2082 = vmatpush.bf16.msra.mxu2 %v2071_v31  ;;  %1877 = vmatpush.bf16.msra.mxu1 %v2071_v31 }
 0x2e9   :  { %v1334_v59 = vsel %vm1254_vm4, %v1296_v56, 0.0 }
 0x2ea   :  { %v1350_v62 = vadd.f32 %v1334_v59, %v1190_v23 }
 0x2eb   :  { %v1144_v7 = vpop.permute.xlu2 %1143 }
 0x2ec   :  { %v1362_v58 = vpack.c.bf16 %v1351_v48, %v1350_v62  ;;  %v1176_v29 = vsel %vm1096_vm15, %v1144_v7, 0.0  ;;  %v1513_v62 = vsel %vm1479_vm7, %v3386_v44, 0.0  ;;  %v1516_v48 = vsel %vm1479_vm7, %v3485_v55, 0.0  ;;  %v2264_v55 = vld [vmem:[%s3970_s1 + $0x8] sm:$0xff] }
 0x2ed   :  { %v1519_v44 = vsel %vm1479_vm7, %v3473_v39, 0.0  ;;  %v4182_v39 = vld [vmem:[#allocation24_spill] sm:$0xff] }
 0x2ee   :  { %2163 = vset.pattern.permute.xlu1 %v4080_v34  ;;  %1458 = vmatmul.bf16.gmra.mxu0 %v1362_v58 }
 0x2ef   :  { %2164 = vset.pattern.permute.xlu2 %v4080_v34  ;;  %1084 = vperm.xlu1 %2163, %v3202_v25   ;;  %v4164_v25 = vld [vmem:[#allocation37_spill] sm:$0xff] }
 0x2f0   :  { %1159 = vperm.xlu2 %2164, %v3520_v35   ;;  %vm296_vm5 = vcmp.eq.s32.totalorder %v4164_v25, %v2849_v13  ;;  %v1483_v25 = vsel %vm1479_vm7, %v2264_v55, 0.0 }
 0x2f1   :  { %v910_v36 = vpop.permute.xlu1 %909  ;;  %v376_v16 = vsel %vm296_vm5, %v4165_v0, 0.0  ;;  %v4178_v0 = vld [vmem:[#allocation46_spill] sm:$0xff] }
 0x2f2   :  { %v392_v2 = vadd.f32 %v376_v16, %v216_v54  ;;  %vm936_vm12 = vcmp.eq.s32.totalorder %v910_v36, %v2849_v13  ;;  %v219_v54 = vsel %vm123_vm6, %v4182_v39, 0.0 }
 0x2f4   :  { %v1233_v10 = vpop.permute.xlu2 %1232 }
 0x2f5   :  { %vm1257_vm0 = vcmp.eq.s32.totalorder %v1233_v10, %v2849_v13  ;;  %v4177_v10 = vld [vmem:[#allocation40_spill] sm:$0xff] }
 0x2f6   :  { %vm299_vm4 = vcmp.eq.s32.totalorder %v4177_v10, %v2849_v13 }
 0x2f7   :  { %1163 = vperm.xlu1 %2163, %v3322_v20   ;;  %v379_v16 = vsel %vm299_vm4, %v4178_v0, 0.0 }
 0x2f8   :  { %2165 = vset.pattern.permute.xlu2 %v4121_v52 }
 0x2f9   :  { %1241 = vperm.xlu2 %2165, %v3173_v30   ;;  %v988_v15 = vpop.permute.xlu1 %987  ;;  %v4167_v30 = vld [vmem:[#allocation60_spill] sm:$0xff] }
 0x2fa   :  { %vm456_vm8 = vcmp.eq.s32.totalorder %v4167_v30, %v2849_v13  ;;  %v1017_v42 = vsel %vm937_vm13, %v988_v15, 0.0  ;;  %v4181_v30 = vld [vmem:[#allocation63_spill] sm:$0xff] }
 0x2fb   :  { %v1033_v47 = vadd.f32 %v1017_v42, %v873_v18  ;;  %v1522_v42 = vsel %vm1479_vm7, %v3520_v35, 0.0  ;;  %v4187_v18 = vld [vmem:[#allocation33_spill] sm:$0xff] }
 0x2fc   :  { %v1308_v50 = vpop.permute.xlu2 %1307 }
 0x2fd   :  { %v1337_v43 = vsel %vm1257_vm0, %v1308_v50, 0.0 }
 0x2ff   :  { %2167 = vset.pattern.permute.xlu1 %v4121_v52  ;;  %v4169_v52 = vld [vmem:[#allocation66_spill] sm:$0xff] }
 0x300   :  { %1319 = vperm.xlu1 %2167, %v3520_v35   ;;  %v536_v21 = vsel %vm456_vm8, %v4169_v52, 0.0  ;;  %vm459_vm8 = vcmp.eq.s32.totalorder %v4181_v30, %v2849_v13  ;;  %v4183_v52 = vld [vmem:[#allocation68_spill] sm:$0xff]  ;;  %v2266_v35 = vld [vmem:[%s3970_s1 + $0x18] sm:$0xff] }
 0x301   :  { %1323 = vperm.xlu2 %2165, %v3322_v20   ;;  %v696_v20 = vsel %vm616_vm9, %v2906_v11, 0.0  ;;  %v552_v19 = vadd.f32 %v536_v21, %v392_v2  ;;  %v4172_v11 = vld [vmem:[#allocation3_spill] sm:$0xff]  ;;  %v539_v21 = vsel %vm459_vm8, %v4183_v52, 0.0 }
 0x302   :  { %v1073_v34 = vpop.permute.xlu1 %1072 }
 0x303   :  { %v712_v27 = vadd.f32 %v696_v20, %v552_v19  ;;  %vm1097_vm14 = vcmp.eq.s32.totalorder %v1073_v34, %v2849_v13  ;;  %v395_v20 = vadd.f32 %v379_v16, %v219_v54  ;;  %v4184_v19 = vld [vmem:[#allocation81_spill] sm:$0xff] }
 0x304   :  { %v1177_v14 = vsel %vm1097_vm14, %v4174_v8, 0.0  ;;  %vm619_vm9 = vcmp.eq.s32.totalorder %v4184_v19, %v2849_v13 }
 0x305   :  { %v872_v37 = vadd.f32 %v856_v33, %v712_v27  ;;  %v916_v28 = vpop.permute.xlu2 %915  ;;  %v1193_v40 = vadd.f32 %v1177_v14, %v1033_v47  ;;  %v699_v33 = vsel %vm619_vm9, %v4185_v17, 0.0  ;;  %v555_v46 = vadd.f32 %v539_v21, %v395_v20  ;;  %v2069_v17 = vld [vmem:[%s3972_s3 + $0x20] sm:$0xff] }
 0x306   :  { %vm938_vm2 = vcmp.eq.s32.totalorder %v916_v28, %v2849_v13 }
 0x307   :  { %v1353_v23 = vadd.f32 %v1337_v43, %v1193_v40  ;;  %v1489_v40 = vsel %vm1479_vm7, %v2266_v35, 0.0  ;;  %v4188_v43 = vld [vmem:[#allocation58_spill] sm:$0xff] }
 0x308   :  { %2168 = vset.pattern.permute.xlu1 %v4120_v22  ;;  %v1016_v22 = vsel %vm936_vm12, %v4172_v11, 0.0  ;;  %v715_v11 = vadd.f32 %v699_v33, %v555_v46 }
 0x309   :  { %v1032_v12 = vadd.f32 %v1016_v22, %v872_v37  ;;  %v2265_v37 = vld [vmem:[%s3970_s1 + $0x10] sm:$0xff] }
 0x30a   :  { %v1486_v51 = vsel %vm1479_vm7, %v2265_v37, 0.0 }
 0x30b   :  { %v1230_v9 = vpop.permute.xlu1 %1229  ;;  %v1192_v1 = vadd.f32 %v1176_v29, %v1032_v12 }
 0x30c   :  { %vm1256_vm1 = vcmp.eq.s32.totalorder %v1230_v9, %v2849_v13 }
 0x30d   :  { %v992_v4 = vpop.permute.xlu2 %991 }
 0x30e   :  { %v1018_v58 = vsel %vm938_vm2, %v992_v4, 0.0 }
 0x30f   :  { %v1034_v36 = vadd.f32 %v1018_v58, %v3431_v3  ;;  %v4179_v3 = vld [vmem:[#allocation47_spill] sm:$0xff] }
 0x310   :  { %vm1258_vm5 = vcmp.eq.s32.totalorder %v4179_v3, %v2849_v13  ;;  %v4190_v58 = vld [vmem:[#allocation11_spill] sm:$0xff] }
 0x313   :  { %v1304_v32 = vpop.permute.xlu1 %1303 }
 0x314   :  { %v1336_v61 = vsel %vm1256_vm1, %v1304_v32, 0.0  ;;  %v1495_v32 = vsel %vm1479_vm7, %v4188_v43, 0.0 }
 0x315   :  { %v1352_v49 = vadd.f32 %v1336_v61, %v1192_v1 }
 0x316   :  { %v1079_v38 = vpop.permute.xlu2 %1078 }
 0x317   :  { %v1363_v45 = vpack.c.bf16 %v1353_v23, %v1352_v49  ;;  %vm1099_vm12 = vcmp.eq.s32.totalorder %v1079_v38, %v2849_v13 }
 0x319   :  { %1463 = vmatmul.bf16.vlgmr.msra.gmra.mxu3 %v1363_v45  ;;  %v4189_v45 = vld [vmem:[#allocation4_spill] sm:$0xff] }
 0x31a   :  { %v1498_v4 = vsel %vm1479_vm7, %v4189_v45, 0.0  ;;  %vm780_vm7 = vcmp.eq.s32.totalorder %v4190_v58, %v2849_v13 }
 0x31c   :  { %v836_v41 = vpop.permute.xlu1 %835 }
 0x31d   :  { %v859_v27 = vsel %vm779_vm10, %v836_v41, 0.0 }
 0x31e   :  { %v1156_v56 = vpop.permute.xlu2 %1155  ;;  %v875_v14 = vadd.f32 %v859_v27, %v715_v11  ;;  %v2065_v11 = vld [vmem:[%s3972_s3] sm:$0xff] }
 0x31f   :  { %v1179_v12 = vsel %vm1099_vm12, %v1156_v56, 0.0 }
 0x325   :  { %v919_v5 = vpop.permute.xlu1 %918 }
 0x326   :  { %vm939_vm11 = vcmp.eq.s32.totalorder %v919_v5, %v2849_v13 }
 0x327   :  { %v1312_v7 = vpop.permute.xlu2 %1311  ;;  %v1019_v8 = vsel %vm939_vm11, %v4187_v18, 0.0 }
 0x328   :  { %v1338_v60 = vsel %vm1258_vm5, %v1312_v7, 0.0  ;;  %v1035_v28 = vadd.f32 %v1019_v8, %v875_v14 }
 0x32a   :  { %1508 = vadd.xlane.f32.xlu2 %v1507_v24  ;;  %1505 = vadd.xlane.f32.xlu1 %v1504_v6  ;;  %v1195_v29 = vadd.f32 %v1179_v12, %v1035_v28  ;;  %v3631_v6 = vpop.f32.mrf.mxu0 }
 0x32e   :  { %v1076_v59 = vpop.permute.xlu1 %1075 }
 0x32f   :  { %vm1098_vm3 = vcmp.eq.s32.totalorder %v1076_v59, %v2849_v13  ;;  %v1082_v59 = vpop.permute.xlu0 %1081 }
 0x330   :  { %v840_v9 = vpop.permute.xlu2 %839  ;;  %vm1100_vm0 = vcmp.eq.s32.totalorder %v1082_v59, %v2849_v13 }
 0x331   :  { %v860_v7 = vsel %vm780_vm7, %v840_v9, 0.0  ;;  %v2066_v9 = vld [vmem:[%s3972_s3 + $0x8] sm:$0xff] }
 0x332   :  { %1514 = vadd.xlane.f32.xlu2 %v1513_v62  ;;  %1517 = vadd.xlane.f32.xlu1 %v1516_v48  ;;  %v3633_v48 = vpop.f32.mrf.mxu0 }
 0x336   :  { %v1152_v15 = vpop.permute.xlu1 %1151 }
 0x337   :  { %v1178_v34 = vsel %vm1098_vm3, %v1152_v15, 0.0  ;;  %v1245_v55 = vpop.permute.xlu0 %1244 }
 0x338   :  { %v1194_v50 = vadd.f32 %v1178_v34, %v1034_v36  ;;  %v4191_v34 = vld [vmem:[#allocation84_spill] sm:$0xff]  ;;  %vm1261_vm2 = vcmp.eq.s32.totalorder %v1245_v55, %v2849_v13 }
 0x339   :  { %v925_v1 = vpop.permute.xlu2 %924 }
 0x33a   :  { %1520 = vadd.xlane.f32.xlu2 %v1519_v44  ;;  %1484 = vadd.xlane.f32.xlu1 %v1483_v25  ;;  %v1354_v2 = vadd.f32 %v1338_v60, %v1194_v50  ;;  %vm941_vm14 = vcmp.eq.s32.totalorder %v925_v1, %v2849_v13  ;;  %v876_v44 = vadd.f32 %v860_v7, %v4191_v34  ;;  %v3644_v57 = vpop.f32.mrf.mxu0 }
 0x33f   :  { %v1239_v22 = vpop.permute.xlu1 %1238  ;;  %v1512_v46 = vpop.xlane.xlu0 %1511 }
 0x340   :  { %vm1259_vm13 = vcmp.eq.s32.totalorder %v1239_v22, %v2849_v13  ;;  %v3676_v8 = vmax.f32 %v1512_v46, 1.0 }
 0x341   :  { %v1004_v38 = vpop.permute.xlu2 %1003 }
 0x342   :  { %1523 = vadd.xlane.f32.xlu2 %v1522_v42  ;;  %1487 = vadd.xlane.f32.xlu1 %v1486_v51  ;;  %v1021_v15 = vsel %vm941_vm14, %v1004_v38, 0.0  ;;  %v3647_v19 = vpop.f32.mrf.mxu0 }
 0x343   :  { %v1037_v0 = vadd.f32 %v1021_v15, %v3455_v53  ;;  %v2070_v53 = vld [vmem:[%s3972_s3 + $0x28] sm:$0xff] }
 0x344   :  { %2083 = vmatpush.bf16.msra.mxu2 %v2070_v53  ;;  %1878 = vmatpush.bf16.msra.mxu1 %v2070_v53 }
 0x347   :  { %v1316_v47 = vpop.permute.xlu1 %1315  ;;  %v1482_v22 = vpop.xlane.xlu0 %1481 }
 0x348   :  { %v1339_v61 = vsel %vm1259_vm13, %v1316_v47, 0.0  ;;  %2084 = vmatpush.bf16.msra.mxu2 %v2069_v17  ;;  %1879 = vmatpush.bf16.msra.mxu1 %v2069_v17  ;;  %v3673_v37 = vmax.f32 %v1482_v22, 1.0 }
 0x349   :  { %v1355_v49 = vadd.f32 %v1339_v61, %v1195_v29 }
 0x34a   :  { %1490 = vadd.xlane.f32.xlu2 %v1489_v40  ;;  %1496 = vadd.xlane.f32.xlu1 %v1495_v32  ;;  %v1160_v24 = vpop.permute.xlu2 %1159  ;;  %v3655_v33 = vpop.f32.mrf.mxu0  ;;  %2171 = vrcp.f32 %v3673_v37  ;;  %vm1549_vm12 = vweird.f32 %v3673_v37 }
 0x34b   :  { %v1364_v23 = vpack.c.bf16 %v1355_v49, %v1354_v2  ;;  %v1180_v50 = vsel %vm1100_vm0, %v1160_v24, 0.0 }
 0x34d   :  { %1468 = vmatmul.bf16.gmra.mxu3 %v1364_v23 }
 0x350   :  { %v922_v41 = vpop.permute.xlu1 %921  ;;  %v3680_v47 = vpop.eup %2171 }
 0x351   :  { %vm940_vm15 = vcmp.eq.s32.totalorder %v922_v41, %v2849_v13  ;;  %v1545_v29 = vmul.f32 %v3680_v47, %v3673_v37  ;;  %vm1550_vm7 = vweird.f32 %v3680_v47 }
 0x352   :  { %1499 = vadd.xlane.f32.xlu2 %v1498_v4  ;;  %v3663_v27 = vpop.f32.mrf.mxu0  ;;  %vm3734_vm0 = vmor %vm1549_vm12, %vm1550_vm7 }
 0x353   :  { %v1242_v62 = vpop.permute.xlu2 %1241  ;;  %v1546_v49 = vsub.f32 1.0, %v1545_v29 }
 0x354   :  { %vm1260_vm3 = vcmp.eq.s32.totalorder %v1242_v62, %v2849_v13 }
 0x358   :  { %v1000_v5 = vpop.permute.xlu1 %999 }
 0x359   :  { %v1020_v10 = vsel %vm940_vm15, %v1000_v5, 0.0 }
 0x35a   :  { %v1036_v16 = vadd.f32 %v1020_v10, %v876_v44  ;;  %v3671_v42 = vpop.f32.mrf.mxu0 }
 0x35b   :  { %v1324_v3 = vpop.permute.xlu2 %1323 }
 0x35c   :  { %v1341_v60 = vsel %vm1261_vm2, %v1324_v3, 0.0  ;;  %v1196_v39 = vadd.f32 %v1180_v50, %v1036_v16  ;;  %v1547_v3 = vmul.f32 %v3680_v47, %v1546_v49  ;;  %vm1699_vm2 = vweird.f32 %v3676_v8 }
 0x35e   :  { %v1548_v46 = vadd.f32 %v3680_v47, %v1547_v3 }
 0x361   :  { %v1085_v56 = vpop.permute.xlu1 %1084 }
 0x362   :  { %vm1101_vm1 = vcmp.eq.s32.totalorder %v1085_v56, %v2849_v13  ;;  %v2068_v13 = vld [vmem:[%s3972_s3 + $0x18] sm:$0xff]  ;;  %v3678_v14 = vpop.f32.mrf.mxu0 }
 0x363   :  { %2085 = vmatpush.bf16.msra.mxu2 %v2068_v13  ;;  %1880 = vmatpush.bf16.msra.mxu1 %v2068_v13 }
 0x367   :  { %2086 = vmatpush.bf16.msra.mxu2 %v2067_v63  ;;  %1881 = vmatpush.bf16.msra.mxu1 %v2067_v63 }
 0x369   :  { %v1164_v36 = vpop.permute.xlu1 %1163 }
 0x36a   :  { %v1181_v25 = vsel %vm1101_vm1, %v1164_v36, 0.0 }
 0x36b   :  { %v1197_v30 = vadd.f32 %v1181_v25, %v1037_v0  ;;  %2087 = vmatpush.bf16.msra.mxu2 %v2066_v9  ;;  %1882 = vmatpush.bf16.msra.mxu1 %v2066_v9  ;;  %v1459_v32 = vpop.f32.mrf.mxu0  ;;  %v3703_v25 = vpop.xlane.xlu0 %1526 }
 0x36d   :  { %v1357_v21 = vadd.f32 %v1341_v60, %v1197_v30 }
 0x36f   :  { %2088 = vmatpush.bf16.msra.mxu2 %v2065_v11  ;;  %1883 = vmatpush.bf16.msra.mxu1 %v2065_v11 }
 0x372   :  { %v1320_v54 = vpop.permute.xlu1 %1319 }
 0x373   :  { %v1340_v52 = vsel %vm1260_vm3, %v1320_v54, 0.0  ;;  %v1461_v54 = vpop.f32.mrf.mxu0 }
 0x374   :  { %v1356_v2 = vadd.f32 %v1340_v52, %v1196_v39  ;;  %v1553_v39 = vand.u32 2147483647, %v3673_v37 }
 0x376   :  { %v1365_v20 = vpack.c.bf16 %v1357_v21, %v1356_v2  ;;  %v1555_v2 = vand.u32 2147483648, %v3673_v37  ;;  %vm3741_vm1 = vcmp.eq.f32.partialorder %v1553_v39, 8.507059e+37 }
 0x378   :  { %1473 = vmatmul.bf16.gmra.mxu3 %v1365_v20 }
 0x39c   :  { %v3724_v22 = vpop.f32.mrf.mxu3 }
 0x39d   :  { %v1509_v51 = vpop.xlane.xlu2 %1508  ;;  %v1506_v18 = vpop.xlane.xlu1 %1505 }
 0x39e   :  { %v1537_v28 = vmax.f32 %v1509_v51, 1.0  ;;  %v1536_v12 = vmax.f32 %v1506_v18, 1.0 }
 0x3a0   :  { %2173 = vrcp.f32 %v1537_v28  ;;  %v1675_v41 = vand.u32 2147483648, %v1536_v12  ;;  %v1690_v38 = vand.u32 2147483648, %v1537_v28  ;;  %vm1684_vm4 = vweird.f32 %v1537_v28 }
 0x3a1   :  { %2175 = vrcp.f32 %v1536_v12  ;;  %v1688_v26 = vand.u32 2147483647, %v1537_v28  ;;  %vm1669_vm6 = vweird.f32 %v1536_v12  ;;  %v1673_v31 = vand.u32 2147483647, %v1536_v12 }
 0x3a2   :  { %2177 = vrcp.f32 %v3676_v8  ;;  %v1691_v7 = vor.u32 1.1754944e-38, %v1690_v38  ;;  %v1676_v34 = vor.u32 1.1754944e-38, %v1675_v41  ;;  %v1552_v38 = vsel %vm3734_vm0, %v3680_v47, %v1548_v46 }
 0x3a3   :  { %vm1689_vm11 = vcmp.eq.f32.partialorder %v1688_v26, 8.507059e+37  ;;  %vm1674_vm13 = vcmp.eq.f32.partialorder %v1673_v31, 8.507059e+37  ;;  %v1703_v26 = vand.u32 2147483647, %v3676_v8 }
 0x3a5   :  { %v1515_v35 = vpop.xlane.xlu2 %1514  ;;  %v1518_v40 = vpop.xlane.xlu1 %1517 }
 0x3a6   :  { %v2174_v43 = vpop.eup %2173  ;;  %v3685_v1 = vmax.f32 %v1515_v35, 1.0  ;;  %v3722_v11 = vmax.f32 %v1518_v40, 1.0 }
 0x3a7   :  { %v2176_v61 = vpop.eup %2175  ;;  %v1680_v23 = vmul.f32 %v2174_v43, %v1537_v28  ;;  %vm1685_vm5 = vweird.f32 %v2174_v43 }
 0x3a8   :  { %v3687_v45 = vpop.eup %2177  ;;  %v1665_v4 = vmul.f32 %v2176_v61, %v1536_v12  ;;  %2179 = vrcp.f32 %v3685_v1  ;;  %vm1670_vm8 = vweird.f32 %v2176_v61  ;;  %vm3692_vm9 = vmor %vm1684_vm4, %vm1685_vm5  ;;  %vm1714_vm14 = vweird.f32 %v3685_v1 }
 0x3a9   :  { %v1681_v5 = vsub.f32 1.0, %v1680_v23  ;;  %v1695_v56 = vmul.f32 %v3687_v45, %v3676_v8  ;;  %vm3696_vm10 = vmor %vm1669_vm6, %vm1670_vm8  ;;  %v1718_v51 = vand.u32 2147483647, %v3685_v1  ;;  %v1720_v29 = vand.u32 2147483648, %v3685_v1 }
 0x3aa   :  { %v1666_v24 = vsub.f32 1.0, %v1665_v4  ;;  %vm1700_vm3 = vweird.f32 %v3687_v45  ;;  %v1705_v4 = vand.u32 2147483648, %v3676_v8 }
 0x3ab   :  { %v1682_v59 = vmul.f32 %v2174_v43, %v1681_v5  ;;  %v1696_v50 = vsub.f32 1.0, %v1695_v56  ;;  %v1494_v5 = vpop.xlane.xlu0 %1493  ;;  %vm3765_vm5 = vcmp.eq.f32.partialorder %v1718_v51, 8.507059e+37  ;;  %vm3775_vm6 = vmor %vm1699_vm2, %vm1700_vm3  ;;  %v1721_v47 = vor.u32 1.1754944e-38, %v1720_v29 }
 0x3ac   :  { %v1667_v62 = vmul.f32 %v2176_v61, %v1666_v24  ;;  %v3786_v8 = vmax.f32 %v1494_v5, 1.0  ;;  %vm1729_vm2 = vweird.f32 %v3722_v11 }
 0x3ad   :  { %v1521_v36 = vpop.xlane.xlu2 %1520  ;;  %v1485_v15 = vpop.xlane.xlu1 %1484  ;;  %v1683_v44 = vadd.f32 %v2174_v43, %v1682_v59  ;;  %v1697_v63 = vmul.f32 %v3687_v45, %v1696_v50 }
 0x3ae   :  { %v3701_v55 = vpop.eup %2179  ;;  %v3705_v0 = vmax.f32 %v1485_v15, 1.0  ;;  %v1668_v16 = vadd.f32 %v2176_v61, %v1667_v62  ;;  %v3728_v18 = vmax.f32 %v1521_v36, 1.0 }
 0x3af   :  { %v1710_v30 = vmul.f32 %v3701_v55, %v3685_v1  ;;  %v1687_v60 = vsel %vm3692_vm9, %v2174_v43, %v1683_v44  ;;  %vm1715_vm15 = vweird.f32 %v3701_v55  ;;  %v1698_v23 = vadd.f32 %v3687_v45, %v1697_v63 }
 0x3b0   :  { %v1672_v52 = vsel %vm3696_vm10, %v2176_v61, %v1668_v16  ;;  %v1692_v21 = vsel %vm1689_vm11, %v1691_v7, %v1687_v60  ;;  %2181 = vrcp.f32 %v3705_v0  ;;  %vm3756_vm4 = vmor %vm1714_vm14, %vm1715_vm15  ;;  %vm1564_vm8 = vweird.f32 %v3705_v0 }
 0x3b1   :  { %v1711_v20 = vsub.f32 1.0, %v1710_v30  ;;  %v1677_v53 = vsel %vm1674_vm13, %v1676_v34, %v1672_v52  ;;  %v1793_v17 = vmul.f32 %v1692_v21, %v1461_v54  ;;  %2183 = vrcp.f32 %v3722_v11 }
 0x3b2   :  { %v1792_v13 = vmul.f32 %v1677_v53, %v1459_v32  ;;  %v1556_v32 = vor.u32 1.1754944e-38, %v1555_v2  ;;  %2185 = vrcp.f32 %v3728_v18  ;;  %v1570_v56 = vand.u32 2147483648, %v3705_v0 }
 0x3b3   :  { %v1712_v9 = vmul.f32 %v3701_v55, %v1711_v20  ;;  %v1568_v58 = vand.u32 2147483647, %v3705_v0  ;;  %v1706_v7 = vor.u32 1.1754944e-38, %v1705_v4  ;;  %v1702_v36 = vsel %vm3775_vm6, %v3687_v45, %v1698_v23 }
 0x3b4   :  { %v1804_v28 = vpack.c.bf16 %v1793_v17, %v1792_v13  ;;  %vm3791_vm10 = vcmp.eq.f32.partialorder %v1703_v26, 8.507059e+37  ;;  %v1557_v3 = vsel %vm3741_vm1, %v1556_v32, %v1552_v38  ;;  %v1571_v45 = vor.u32 1.1754944e-38, %v1570_v56  ;;  %v1503_v32 = vpop.xlane.xlu0 %1502 }
 0x3b5   :  { %v3739_v35 = vpop.xlane.xlu2 %1523  ;;  %v1488_v40 = vpop.xlane.xlu1 %1487  ;;  %v1713_v37 = vadd.f32 %v3701_v55, %v1712_v9  ;;  %vm1569_vm12 = vcmp.eq.f32.partialorder %v1568_v58, 8.507059e+37  ;;  %v1707_v21 = vsel %vm3791_vm10, %v1706_v7, %v1702_v36  ;;  %v1784_v13 = vmul.f32 %v1557_v3, %v3631_v6 }
 0x3b6   :  { %v3748_v61 = vmax.f32 %v1488_v40, 1.0  ;;  %1904 = vmatmul.bf16.vlgmr.msra.gmra.mxu2 %v1804_v28  ;;  %v2182_v49 = vpop.eup %2181  ;;  %v1794_v46 = vmul.f32 %v1707_v21, %v3724_v22  ;;  %v3840_v5 = vmax.f32 %v1503_v32, 1.0  ;;  %v1733_v3 = vand.u32 2147483647, %v3722_v11 }
 0x3b7   :  { %v1560_v1 = vmul.f32 %v2182_v49, %v3705_v0  ;;  %v1717_v59 = vsel %vm3756_vm4, %v3701_v55, %v1713_v37  ;;  %vm1565_vm9 = vweird.f32 %v2182_v49  ;;  %v3795_v34 = vpop.eup %2183  ;;  %v1466_v0 = vpop.f32.mrf.mxu3  ;;  %v1542_v15 = vmax.f32 %v3739_v35, 1.0 }
 0x3b8   :  { %2187 = vrcp.f32 %v3748_v61  ;;  %v1722_v44 = vsel %vm3765_vm5, %v1721_v47, %v1717_v59  ;;  %vm3803_vm11 = vmor %vm1564_vm8, %vm1565_vm9  ;;  %v3807_v30 = vpop.eup %2185  ;;  %v1725_v51 = vmul.f32 %v3795_v34, %v3722_v11  ;;  %vm1579_vm13 = vweird.f32 %v3748_v61 }
 0x3b9   :  { %v1561_v62 = vsub.f32 1.0, %v1560_v1  ;;  %2189 = vrcp.f32 %v3786_v8  ;;  %v1795_v2 = vmul.f32 %v1722_v44, %v1466_v0  ;;  %v1740_v28 = vmul.f32 %v3807_v30, %v3728_v18 }
 0x3ba   :  { %v1585_v22 = vand.u32 2147483648, %v3748_v61  ;;  %v1583_v4 = vand.u32 2147483647, %v3748_v61  ;;  %v1735_v59 = vand.u32 2147483648, %v3722_v11  ;;  %vm1730_vm3 = vweird.f32 %v3795_v34 }
 0x3bb   :  { %v1562_v10 = vmul.f32 %v2182_v49, %v1561_v62  ;;  %v1805_v29 = vpack.c.bf16 %v1795_v2, %v1794_v46  ;;  %v1741_v41 = vsub.f32 1.0, %v1740_v28  ;;  %vm1744_vm5 = vweird.f32 %v3728_v18  ;;  %vm3867_vm9 = vmor %vm1729_vm2, %vm1730_vm3 }
 0x3bc   :  { %v1586_v62 = vor.u32 1.1754944e-38, %v1585_v22  ;;  %vm1584_vm1 = vcmp.eq.f32.partialorder %v1583_v4, 8.507059e+37  ;;  %vm1745_vm8 = vweird.f32 %v3807_v30  ;;  %v1748_v0 = vand.u32 2147483647, %v3728_v18 }
 0x3bd   :  { %v1491_v55 = vpop.xlane.xlu2 %1490  ;;  %v1497_v16 = vpop.xlane.xlu1 %1496  ;;  %v1563_v54 = vadd.f32 %v2182_v49, %v1562_v10  ;;  %v1742_v36 = vmul.f32 %v3807_v30, %v1741_v41  ;;  %vm3878_vm10 = vmor %vm1744_vm5, %vm1745_vm8  ;;  %v1736_v46 = vor.u32 1.1754944e-38, %v1735_v59 }
 0x3be   :  { %v1531_v60 = vmax.f32 %v1491_v55, 1.0  ;;  %v3809_v39 = vmax.f32 %v1497_v16, 1.0  ;;  %v3811_v52 = vpop.eup %2187 }
 0x3bf   :  { %v1575_v20 = vmul.f32 %v3811_v52, %v3748_v61  ;;  %v1567_v53 = vsel %vm3803_vm11, %v2182_v49, %v1563_v54  ;;  %v3829_v43 = vpop.eup %2189  ;;  %vm1580_vm7 = vweird.f32 %v3811_v52  ;;  %v1743_v21 = vadd.f32 %v3807_v30, %v1742_v36 }
 0x3c0   :  { %2191 = vrcp.f32 %v1531_v60  ;;  %v1572_v17 = vsel %vm1569_vm12, %v1571_v45, %v1567_v53  ;;  %v1605_v38 = vmul.f32 %v3829_v43, %v3786_v8  ;;  %vm3842_vm14 = vmor %vm1579_vm13, %vm1580_vm7  ;;  %v1600_v24 = vand.u32 2147483648, %v1531_v60 }
 0x3c1   :  { %2193 = vrcp.f32 %v3809_v39  ;;  %v1576_v63 = vsub.f32 1.0, %v1575_v20  ;;  %v1785_v9 = vmul.f32 %v1572_v17, %v3633_v48  ;;  %v1726_v48 = vsub.f32 1.0, %v1725_v51 }
 0x3c2   :  { %vm1594_vm15 = vweird.f32 %v1531_v60  ;;  %v1598_v31 = vand.u32 2147483647, %v1531_v60  ;;  %v1601_v10 = vor.u32 1.1754944e-38, %v1600_v24  ;;  %v1750_v45 = vand.u32 2147483648, %v3728_v18 }
 0x3c3   :  { %v1800_v12 = vpack.c.bf16 %v1785_v9, %v1784_v13  ;;  %v1577_v40 = vmul.f32 %v3811_v52, %v1576_v63  ;;  %v1727_v61 = vmul.f32 %v3795_v34, %v1726_v48  ;;  %v1606_v2 = vsub.f32 1.0, %v1605_v38 }
 0x3c4   :  { %vm1599_vm6 = vcmp.eq.f32.partialorder %v1598_v31, 8.507059e+37  ;;  %2195 = vrcp.f32 %v3840_v5  ;;  %vm1734_vm11 = vcmp.eq.f32.partialorder %v1733_v3, 8.507059e+37  ;;  %v1751_v63 = vor.u32 1.1754944e-38, %v1750_v45 }
 0x3c5   :  { %1884 = vmatmul.bf16.vlgmr.msra.gmra.mxu1 %v1800_v12  ;;  %v1578_v23 = vadd.f32 %v3811_v52, %v1577_v40  ;;  %v1500_v56 = vpop.xlane.xlu2 %1499  ;;  %v1747_v28 = vsel %vm3878_vm10, %v3807_v30, %v1743_v21  ;;  %vm1749_vm12 = vcmp.eq.f32.partialorder %v1748_v0, 8.507059e+37  ;;  %v1607_v12 = vmul.f32 %v3829_v43, %v1606_v2 }
 0x3c6   :  { %v2192_v6 = vpop.eup %2191  ;;  %1909 = vmatmul.bf16.gmra.mxu2 %v1805_v29  ;;  %v3861_v44 = vmax.f32 %v1500_v56, 1.0  ;;  %vm1624_vm13 = vweird.f32 %v3809_v39  ;;  %v1752_v29 = vsel %vm1749_vm12, %v1751_v63, %v1747_v28  ;;  %v1628_v30 = vand.u32 2147483647, %v3809_v39 }
 0x3c7   :  { %v3834_v37 = vpop.eup %2193  ;;  %v1590_v49 = vmul.f32 %v2192_v6, %v1531_v60  ;;  %vm1595_vm0 = vweird.f32 %v2192_v6  ;;  %v1582_v58 = vsel %vm3842_vm14, %v3811_v52, %v1578_v23  ;;  %v1728_v60 = vadd.f32 %v3795_v34, %v1727_v61 }
 0x3c8   :  { %v1620_v47 = vmul.f32 %v3834_v37, %v3809_v39  ;;  %vm3856_vm4 = vmor %vm1594_vm15, %vm1595_vm0  ;;  %v1587_v50 = vsel %vm1584_vm1, %v1586_v62, %v1582_v58  ;;  %2197 = vrcp.f32 %v3861_v44  ;;  %vm1625_vm7 = vweird.f32 %v3834_v37 }
 0x3c9   :  { %v1591_v1 = vsub.f32 1.0, %v1590_v49  ;;  %v1786_v17 = vmul.f32 %v1587_v50, %v3644_v57  ;;  %v1732_v51 = vsel %vm3867_vm9, %v3795_v34, %v1728_v60  ;;  %vm1609_vm14 = vweird.f32 %v3786_v8  ;;  %vm3901_vm0 = vmor %vm1624_vm13, %vm1625_vm7 }
 0x3ca   :  { %v1621_v16 = vsub.f32 1.0, %v1620_v47  ;;  %vm1610_vm15 = vweird.f32 %v3829_v43  ;;  %v1630_v57 = vand.u32 2147483648, %v3809_v39  ;;  %v1737_v34 = vsel %vm1734_vm11, %v1736_v46, %v1732_v51 }
 0x3cb   :  { %v1592_v7 = vmul.f32 %v2192_v6, %v1591_v1  ;;  %v1608_v22 = vadd.f32 %v3829_v43, %v1607_v12  ;;  %v1613_v49 = vand.u32 2147483647, %v3786_v8  ;;  %vm3909_vm1 = vmor %vm1609_vm14, %vm1610_vm15  ;;  %vm1629_vm2 = vcmp.eq.f32.partialorder %v1628_v30, 8.507059e+37 }
 0x3cc   :  { %v1622_v9 = vmul.f32 %v3834_v37, %v1621_v16  ;;  %v1631_v38 = vor.u32 1.1754944e-38, %v1630_v57  ;;  %v1658_v16 = vand.u32 2147483647, %v3840_v5  ;;  %vm1759_vm13 = vweird.f32 %v1542_v15 }
 0x3cd   :  { %v1593_v55 = vadd.f32 %v2192_v6, %v1592_v7  ;;  %vm1614_vm3 = vcmp.eq.f32.partialorder %v1613_v49, 8.507059e+37  ;;  %v1543_v7 = vmax.f32 %v3703_v25, 1.0  ;;  %v1643_v25 = vand.u32 2147483647, %v3861_v44 }
 0x3ce   :  { %v1623_v40 = vadd.f32 %v3834_v37, %v1622_v9  ;;  %vm1659_vm12 = vcmp.eq.f32.partialorder %v1658_v16, 8.507059e+37  ;;  %v1765_v9 = vand.u32 2147483648, %v1542_v15 }
 0x3cf   :  { %v1597_v52 = vsel %vm3856_vm4, %v2192_v6, %v1593_v55  ;;  %v1615_v6 = vand.u32 2147483648, %v3786_v8  ;;  %v1612_v8 = vsel %vm3909_vm1, %v3829_v43, %v1608_v22  ;;  %vm1639_vm4 = vweird.f32 %v3861_v44 }
 0x3d0   :  { %v1469_v11 = vpop.f32.mrf.mxu3  ;;  %v1602_v20 = vsel %vm1599_vm6, %v1601_v10, %v1597_v52  ;;  %v1627_v24 = vsel %vm3901_vm0, %v3834_v37, %v1623_v40  ;;  %2199 = vrcp.f32 %v1543_v7  ;;  %v1645_v43 = vand.u32 2147483648, %v3861_v44 }
 0x3d1   :  { %v1787_v13 = vmul.f32 %v1602_v20, %v3647_v19  ;;  %v2196_v19 = vpop.eup %2195  ;;  %v1796_v41 = vmul.f32 %v1737_v34, %v1469_v11  ;;  %v1616_v1 = vor.u32 1.1754944e-38, %v1615_v6  ;;  %v1632_v56 = vsel %vm1629_vm2, %v1631_v38, %v1627_v24 }
 0x3d2   :  { %v2198_v32 = vpop.eup %2197  ;;  %v1650_v47 = vmul.f32 %v2196_v19, %v3840_v5  ;;  %v1789_v58 = vmul.f32 %v1632_v56, %v3663_v27  ;;  %vm1654_vm6 = vweird.f32 %v3840_v5  ;;  %vm1655_vm8 = vweird.f32 %v2196_v19 }
 0x3d3   :  { %v1801_v18 = vpack.c.bf16 %v1787_v13, %v1786_v17  ;;  %v1635_v26 = vmul.f32 %v2198_v32, %v3861_v44  ;;  %v1617_v59 = vsel %vm1614_vm3, %v1616_v1, %v1612_v8  ;;  %vm1640_vm5 = vweird.f32 %v2198_v32  ;;  %vm1656_vm10 = vmor %vm1654_vm6, %vm1655_vm8 }
 0x3d4   :  { %v1651_v62 = vsub.f32 1.0, %v1650_v47  ;;  %v1788_v37 = vmul.f32 %v1617_v59, %v3655_v33  ;;  %v1660_v33 = vand.u32 2147483648, %v3840_v5  ;;  %2201 = vrcp.f32 %v1542_v15  ;;  %vm1641_vm9 = vmor %vm1639_vm4, %vm1640_vm5  ;;  %v3940_v47 = vld [vmem:[%s3973_s4] ss:$0 sm:$0xff] }
 0x3d5   :  { %1889 = vmatmul.bf16.gmra.mxu1 %v1801_v18  ;;  %v1636_v61 = vsub.f32 1.0, %v1635_v26  ;;  %v1646_v3 = vor.u32 1.1754944e-38, %v1645_v43  ;;  %vm1644_vm11 = vcmp.eq.f32.partialorder %v1643_v25, 8.507059e+37  ;;  %vm1774_vm14 = vweird.f32 %v1543_v7 }
 0x3d6   :  { %v1652_v10 = vmul.f32 %v2196_v19, %v1651_v62  ;;  %v1802_v55 = vpack.c.bf16 %v1789_v58, %v1788_v37  ;;  %v2200_v45 = vpop.eup %2199  ;;  %v1661_v60 = vor.u32 1.1754944e-38, %v1660_v33  ;;  %v1780_v51 = vand.u32 2147483648, %v1543_v7 }
 0x3d7   :  { %v1637_v36 = vmul.f32 %v2198_v32, %v1636_v61  ;;  %v1770_v11 = vmul.f32 %v2200_v45, %v1543_v7  ;;  %vm1775_vm15 = vweird.f32 %v2200_v45  ;;  %v1778_v12 = vand.u32 2147483647, %v1543_v7 }
 0x3d8   :  { %v1471_v23 = vpop.f32.mrf.mxu3  ;;  %v1653_v35 = vadd.f32 %v2196_v19, %v1652_v10  ;;  %vm1776_vm1 = vmor %vm1774_vm14, %vm1775_vm15  ;;  %v1781_v57 = vor.u32 1.1754944e-38, %v1780_v51 }
 0x3d9   :  { %v1797_v39 = vmul.f32 %v1752_v29, %v1471_v23  ;;  %v1638_v27 = vadd.f32 %v2198_v32, %v1637_v36  ;;  %v1771_v5 = vsub.f32 1.0, %v1770_v11  ;;  %vm1779_vm3 = vcmp.eq.f32.partialorder %v1778_v12, 8.507059e+37 }
 0x3da   :  { %v1657_v54 = vsel %vm1656_vm10, %v2196_v19, %v1653_v35  ;;  %v2202_v52 = vpop.eup %2201 }
 0x3db   :  { %v1806_v31 = vpack.c.bf16 %v1797_v39, %v1796_v41  ;;  %v1642_v50 = vsel %vm1641_vm9, %v2198_v32, %v1638_v27  ;;  %v1662_v0 = vsel %vm1659_vm12, %v1661_v60, %v1657_v54  ;;  %v1755_v2 = vmul.f32 %v2202_v52, %v1542_v15 }
 0x3dc   :  { %v1647_v21 = vsel %vm1644_vm11, %v1646_v3, %v1642_v50  ;;  %v1791_v20 = vmul.f32 %v1662_v0, %v3678_v14  ;;  %v1772_v46 = vmul.f32 %v2200_v45, %v1771_v5  ;;  %vm1760_vm7 = vweird.f32 %v2202_v52 }
 0x3dd   :  { %1914 = vmatmul.bf16.gmra.mxu2 %v1806_v31  ;;  %v1790_v44 = vmul.f32 %v1647_v21, %v3671_v42  ;;  %v1756_v17 = vsub.f32 1.0, %v1755_v2  ;;  %vm1761_vm0 = vmor %vm1759_vm13, %vm1760_vm7  ;;  %v1763_v42 = vand.u32 2147483647, %v1542_v15  ;;  %v1766_v14 = vor.u32 1.1754944e-38, %v1765_v9 }
 0x3de   :  { %v1773_v28 = vadd.f32 %v2200_v45, %v1772_v46  ;;  %v12_v0 = vstv %s3974_s6 }
 0x3df   :  { %v1803_v53 = vpack.c.bf16 %v1791_v20, %v1790_v44  ;;  %v1757_v13 = vmul.f32 %v2202_v52, %v1756_v17  ;;  %vm1764_vm2 = vcmp.eq.f32.partialorder %v1763_v42, 8.507059e+37  ;;  %13 = vst [vmem:[#allocation2] sm:$0x1] %v12_v0  ;;  %v1941_v42 = vld [vmem:[%s3975_s5] sm:$0x1] }
 0x3e0   :  { %v1777_v34 = vsel %vm1776_vm1, %v2200_v45, %v1773_v28 }
 0x3e1   :  { %v1758_v18 = vadd.f32 %v2202_v52, %v1757_v13  ;;  %v1782_v30 = vsel %vm1779_vm3, %v1781_v57, %v1777_v34 }
 0x3e3   :  { %v1762_v19 = vsel %vm1761_vm0, %v2202_v52, %v1758_v18 }
 0x3e4   :  { %v1767_v29 = vsel %vm1764_vm2, %v1766_v14, %v1762_v19 }
 0x3e5   :  { %1894 = vmatmul.bf16.gmra.mxu1 %v1802_v55 }
 0x3f5   :  { %1899 = vmatmul.bf16.gmra.mxu1 %v1803_v53  ;;  %v1942_v53 = vld [vmem:[#allocation2] sm:$0x1] }
 0x3f6   :  { %1945 = vperm.xlu1 %2168, %v1942_v53  }
 0x3fb   :  { %v1474_v63 = vpop.f32.mrf.mxu3 }
 0x3fc   :  { %v1798_v32 = vmul.f32 %v1767_v29, %v1474_v63 }
 0x403   :  { %v1476_v40 = vpop.f32.mrf.mxu3 }
 0x404   :  { %v1799_v6 = vmul.f32 %v1782_v30, %v1476_v40 }
 0x406   :  { %v1807_v48 = vpack.c.bf16 %v1799_v6, %v1798_v32 }
 0x408   :  { %1919 = vmatmul.bf16.gmra.mxu2 %v1807_v48 }
 0x439   :  { %v1905_v22 = vpop.f32.mrf.mxu2 }
 0x43a   :  { %v1906_v35 = vadd.f32 %v3940_v47, %v1905_v22 }
 0x441   :  { %v1907_v49 = vpop.f32.mrf.mxu2 }
 0x442   :  { %v3933_v4 = vpop.f32.mrf.mxu1  ;;  %v1908_v25 = vadd.f32 %v3940_v47, %v1907_v49 }
 0x443   :  { %v1886_v63 = vadd.f32 %v3940_v47, %v3933_v4 }
 0x449   :  { %v1910_v23 = vpop.f32.mrf.mxu2 }
 0x44a   :  { %v3935_v39 = vpop.f32.mrf.mxu1  ;;  %v1911_v43 = vadd.f32 %v3940_v47, %v1910_v23 }
 0x44b   :  { %v1888_v13 = vadd.f32 %v3940_v47, %v3935_v39 }
 0x451   :  { %v1912_v41 = vpop.f32.mrf.mxu2 }
 0x452   :  { %v1890_v26 = vpop.f32.mrf.mxu1  ;;  %v1913_v15 = vadd.f32 %v3940_v47, %v1912_v41 }
 0x453   :  { %v1891_v17 = vadd.f32 %v3940_v47, %v1890_v26 }
 0x45a   :  { %v1892_v1 = vpop.f32.mrf.mxu1 }
 0x45b   :  { %v1893_v11 = vadd.f32 %v3940_v47, %v1892_v1 }
 0x460   :  { %v1915_v38 = vpop.f32.mrf.mxu2 }
 0x461   :  { %v1916_v37 = vadd.f32 %v3940_v47, %v1915_v38 }
 0x462   :  { %v1895_v8 = vpop.f32.mrf.mxu1 }
 0x463   :  { %v1896_v44 = vadd.f32 %v3940_v47, %v1895_v8 }
 0x468   :  { %v1917_v24 = vpop.f32.mrf.mxu2  ;;  %v1946_v28 = vpop.permute.xlu1 %1945 }
 0x469   :  { %v1918_v62 = vadd.f32 %v3940_v47, %v1917_v24  ;;  %v1948_v12 = vperm.slane %v1946_v28, 0 }
 0x46a   :  { %v1897_v58 = vpop.f32.mrf.mxu1 }
 0x46b   :  { %v1898_v52 = vadd.f32 %v3940_v47, %v1897_v58 }
 0x472   :  { %v1900_v55 = vpop.f32.mrf.mxu1 }
 0x473   :  { %v1901_v60 = vadd.f32 %v3940_v47, %v1900_v55 }
 0x47a   :  { %v1902_v16 = vpop.f32.mrf.mxu1 }
 0x47b   :  { %v1903_v50 = vadd.f32 %v3940_v47, %v1902_v16 }
 0x48b   :  { %v1920_v31 = vpop.f32.mrf.mxu2 }
 0x48c   :  { %v1921_v59 = vadd.f32 %v3940_v47, %v1920_v31 }
 0x493   :  { %v1922_v56 = vpop.f32.mrf.mxu2 }
 0x494   :  { %v1923_v61 = vadd.f32 %v3940_v47, %v1922_v56 }
 0x496   :  { %2203 = vtanh.f32 %v1923_v61 }
 0x497   :  { %2205 = vtanh.f32 %v1921_v59 }
 0x498   :  { %2207 = vtanh.f32 %v1918_v62 }
 0x499   :  { %2209 = vtanh.f32 %v1916_v37 }
 0x49a   :  { %2211 = vtanh.f32 %v1913_v15 }
 0x49b   :  { %2213 = vtanh.f32 %v1911_v43 }
 0x49c   :  { %v2204_v7 = vpop.eup %2203  ;;  %2215 = vtanh.f32 %v1908_v25 }
 0x49d   :  { %1949 = vmatpush.xpose.msrb.mxu2 %v2204_v7  ;;  %v2206_v36 = vpop.eup %2205  ;;  %2217 = vtanh.f32 %v1906_v35 }
 0x49e   :  { %v2208_v10 = vpop.eup %2207  ;;  %2219 = vtanh.f32 %v1903_v50 }
 0x49f   :  { %v2210_v27 = vpop.eup %2209  ;;  %2221 = vtanh.f32 %v1901_v60 }
 0x4a0   :  { %v2212_v33 = vpop.eup %2211  ;;  %2223 = vtanh.f32 %v1898_v52 }
 0x4a1   :  { %1950 = vmatpush.xpose.msrb.mxu2 %v2206_v36  ;;  %v2214_v3 = vpop.eup %2213  ;;  %2225 = vtanh.f32 %v1896_v44 }
 0x4a2   :  { %v2216_v45 = vpop.eup %2215  ;;  %2227 = vtanh.f32 %v1893_v11 }
 0x4a3   :  { %v2218_v54 = vpop.eup %2217  ;;  %2229 = vtanh.f32 %v1891_v17 }
 0x4a4   :  { %v2220_v21 = vpop.eup %2219  ;;  %2231 = vtanh.f32 %v1888_v13 }
 0x4a5   :  { %1951 = vmatpush.xpose.msrb.mxu2 %v2208_v10  ;;  %v2222_v2 = vpop.eup %2221  ;;  %2233 = vtanh.f32 %v1886_v63 }
 0x4a6   :  { %v2224_v20 = vpop.eup %2223 }
 0x4a7   :  { %v2226_v5 = vpop.eup %2225 }
 0x4a8   :  { %v2228_v46 = vpop.eup %2227 }
 0x4a9   :  { %1952 = vmatpush.xpose.msrb.mxu2 %v2210_v27  ;;  %v2230_v9 = vpop.eup %2229 }
 0x4aa   :  { %v2232_v51 = vpop.eup %2231 }
 0x4ab   :  { %v2234_v18 = vpop.eup %2233 }
 0x4ad   :  { %1953 = vmatpush.xpose.msrb.mxu2 %v2212_v33 }
 0x4b1   :  { %1954 = vmatpush.xpose.msrb.mxu2 %v2214_v3 }
 0x4b5   :  { %1955 = vmatpush.xpose.msrb.mxu2 %v2216_v45 }
 0x4b9   :  { %1956 = vmatpush.xpose.msrb.mxu2 %v2218_v54 }
 0x4bd   :  { %1957 = vmatpush.xpose.msrb.mxu2 %v2220_v21 }
 0x4c1   :  { %1958 = vmatpush.xpose.msrb.mxu2 %v2222_v2 }
 0x4c5   :  { %1959 = vmatpush.xpose.msrb.mxu2 %v2224_v20 }
 0x4c9   :  { %1960 = vmatpush.xpose.msrb.mxu2 %v2226_v5 }
 0x4cd   :  { %1961 = vmatpush.xpose.msrb.mxu2 %v2228_v46 }
 0x4d1   :  { %1962 = vmatpush.xpose.msrb.mxu2 %v2230_v9 }
 0x4d5   :  { %1963 = vmatpush.xpose.msrb.mxu2 %v2232_v51 }
 0x4d9   :  { %1964 = vmatpush.xpose.msrb.mxu2 %v2234_v18 }
 0x4dc   :  { %1965 = vmatmul.f32.vlgmr.msrb.gmra.mxu2 %v1941_v42 }
 0x55f   :  { %v1966_v14 = vpop.f32.mrf.mxu2 }
 0x560   :  { %v1967_v57 = vadd.f32 %v1966_v14, %v1948_v12 }
 0x562   :  { %v1969_v19 = vsub.f32 0.0, %v1967_v57 }
 0x564   :  { %v1970_v34 = vmul.f32 1.442695, %v1969_v19 }
 0x566   :  { %2235 = vpow2.f32 %v1970_v34 }
 0x56c   :  { %v2236_v29 = vpop.eup %2235 }
 0x56d   :  { %v1972_v40 = vadd.f32 1.0, %v2236_v29 }
 0x56f   :  { %2237 = vrcp.f32 %v1972_v40  ;;  %v1984_v48 = vand.u32 2147483648, %v1972_v40  ;;  %v1982_v49 = vand.u32 2147483647, %v1972_v40  ;;  %vm1978_vm5 = vweird.f32 %v1972_v40 }
 0x571   :  { %v1985_v4 = vor.u32 1.1754944e-38, %v1984_v48  ;;  %vm1983_vm8 = vcmp.eq.f32.partialorder %v1982_v49, 8.507059e+37 }
 0x575   :  { %v2238_v30 = vpop.eup %2237 }
 0x576   :  { %v1974_v32 = vmul.f32 %v2238_v30, %v1972_v40  ;;  %vm1979_vm4 = vweird.f32 %v2238_v30 }
 0x577   :  { %vm1980_vm6 = vmor %vm1978_vm5, %vm1979_vm4 }
 0x578   :  { %v1975_v6 = vsub.f32 1.0, %v1974_v32 }
 0x57a   :  { %v1976_v22 = vmul.f32 %v2238_v30, %v1975_v6 }
 0x57c   :  { %v1977_v23 = vadd.f32 %v2238_v30, %v1976_v22 }
 0x57e   :  { %v1981_v41 = vsel %vm1980_vm6, %v2238_v30, %v1977_v23 }
 0x57f   :  { %v1986_v39 = vsel %vm1983_vm8, %v1985_v4, %v1981_v41 }
 0x580   :  { %1988 = vst [vmem:[%s3976_s7] sm:$0x1] %v1986_v39 }

</bundles_post_ra>
